<compile_context>
chip_gen: v7x
topology: tpu7x:2x2x1
jax: 0.10.0
libtpu: 0.0.40
codegen_flags: <defaults>
</compile_context>

<pallas_src>
import functools

import jax
import jax.numpy as jnp
import numpy as np
from jax.experimental import pallas as pl
from jax.experimental.pallas import tpu as pltpu


# ----------------------------------------------------------------------------
# Fused kernel: all SearchableLayers + AdaptiveAvgPool1d + final_proj
# ----------------------------------------------------------------------------
def _supernet_kernel(x_ref, wlr_ref, blr_ref, wc_ref, bc_ref, wr2p_ref,
                     br2_ref, pool_ref, wf_ref, bf_ref, o_ref, *, num_layers):
    f32 = jnp.float32
    x = x_ref[...]                                # (B*S, D), batch folded into M
    rows, d = x.shape

    # Conv length-edge masks (lane axis == Conv1d length axis).  Built once and
    # reused by every layer; rows == B*S == B*Dout because dims are square.
    lane = jax.lax.broadcasted_iota(jnp.int32, (rows, d), 1)
    m_prev = lane >= 1                            # position l-1 exists
    m_next = lane <= d - 2                        # position l+1 exists

    for l in range(num_layers):
        wlr = wlr_ref[l]                          # (D, 2*Dout) = [w0*Wlin^T + w2*I | Wr1^T]
        dout = wlr.shape[1] // 2

        # 'linear' (x w0), 'moe' identity (x w2, folded as w2*I into the weight)
        # and the first 'residual' matmul: one dot, N = 2*Dout lanes.
        lr = jnp.dot(x, wlr, preferred_element_type=f32) + blr_ref[l]
        lin_id = lr[:, :dout]                     # w0*linear + w2*x  (offset-0 lane slice)
        # Second residual matmul (pre-scaled by w3): relu(lr) @ [0 ; w3*Wr2^T].
        # The zeroed top half kills the lin/identity lanes, so no lane-offset
        # slicing is required.
        res = jnp.dot(jnp.maximum(lr, 0.0), wr2p_ref[l],
                      preferred_element_type=f32) + br2_ref[l]

        # 'conv': Conv1d(in_dim, out_dim, k=3, padding=1), whole batch in ONE
        # MXU dot.  The block-diagonal (3*B*Dout, B*S) weight contracts the
        # channel (sublane) axis per sample; the previous/next taps are applied
        # by shifting the dot output along the length (lane) axis -- shifting
        # and the channel contraction commute, so no per-sample loop and no
        # concatenates are needed.
        y = jnp.dot(wc_ref[l], x, preferred_element_type=f32)   # (3*B*Dout, D)
        bd = y.shape[0] // 3
        y_prev = y[:bd]                           # tap k=0 -> uses x[.., l-1]
        y_mid = y[bd:2 * bd]                      # tap k=1 -> uses x[.., l]
        y_next = y[2 * bd:]                       # tap k=2 -> uses x[.., l+1]
        conv = (jnp.where(m_prev, pltpu.roll(y_prev, 1, axis=1), 0.0)
                + y_mid
                + jnp.where(m_next, pltpu.roll(y_next, d - 1, axis=1), 0.0)
                + bc_ref[l])                      # bias pre-scaled by w1, tiled (B*Dout, D)

        # softmax(alpha)-weighted mixture; all weights already folded in.
        x = lin_id + conv + res

    # Head: transpose(1,2) + AdaptiveAvgPool1d(1) + squeeze == per-sample mean
    # over S, done as one tiny dot with a precomputed (B, B*S) pooling matrix
    # (no cross-sublane reductions, no concatenates), then final_proj.
    pooled = jnp.dot(pool_ref[...], x, preferred_element_type=f32)       # (B, D)
    o_ref[...] = (jnp.dot(pooled, wf_ref[...], preferred_element_type=f32)
                  + bf_ref[...])


# ----------------------------------------------------------------------------
# Wrapper
# ----------------------------------------------------------------------------
@jax.jit
def supernet_forward(x, packed):
    B, S, D = x.shape
    L, Din, two_dout = packed["Wlr"].shape
    if not (S == D == Din and two_dout == 2 * D):
        raise ValueError("SuperNet kernel assumes square dims S == in_dim == out_dim")
    if packed["Wc"].shape[2] != B * S:
        raise ValueError("packed conv weights were built for a different batch size")
    d_out_final = packed["WfT"].shape[1]
    x2d = x.reshape(B * S, D)                     # fold batch into matmul M dim

    vmem = pl.BlockSpec(memory_space=pltpu.MemorySpace.VMEM)
    kernel = functools.partial(_supernet_kernel, num_layers=L)
    return pl.pallas_call(
        kernel,
        out_shape=jax.ShapeDtypeStruct((B, d_out_final), jnp.float32),
        in_specs=[vmem] * 10,
        out_specs=vmem,
    )(x2d, packed["Wlr"], packed["blr"], packed["Wc"], packed["bc"],
      packed["Wr2p"], packed["br2"], packed["pool"], packed["WfT"], packed["bf"])


# ----------------------------------------------------------------------------
# Deterministic parameter construction (matches the module's __init__ shapes)
# ----------------------------------------------------------------------------
def _linear_init(kw, kb, out_dim, in_dim):
    bound = 1.0 / np.sqrt(in_dim)
    W = jax.random.uniform(kw, (out_dim, in_dim), jnp.float32, -bound, bound)
    b = jax.random.uniform(kb, (out_dim,), jnp.float32, -bound, bound)
    return W, b


def init_layer_params(key, in_dim, out_dim):
    ks = jax.random.split(key, 8)
    Wlin, blin = _linear_init(ks[0], ks[1], out_dim, in_dim)
    cbound = 1.0 / np.sqrt(in_dim * 3)
    Wc = jax.random.uniform(ks[2], (out_dim, in_dim, 3), jnp.float32, -cbound, cbound)
    bc = jax.random.uniform(ks[3], (out_dim,), jnp.float32, -cbound, cbound)
    Wr1, br1 = _linear_init(ks[4], ks[5], out_dim, in_dim)
    Wr2, br2 = _linear_init(ks[6], ks[7], out_dim, out_dim)
    # alpha = zeros -> softmax gives uniform 0.25 weights; all > 0.01 so every
    # candidate op fires (the pack-time fold below assumes exactly that).
    mixw = jax.nn.softmax(jnp.zeros((4,), jnp.float32))
    return dict(
        mixw=mixw,
        WlinT=jnp.asarray(Wlin.T), blin=blin.reshape(1, out_dim),
        Wc0=Wc[:, :, 0], Wc1=Wc[:, :, 1], Wc2=Wc[:, :, 2],
        bc=bc.reshape(out_dim, 1),
        Wr1T=jnp.asarray(Wr1.T), br1=br1.reshape(1, out_dim),
        Wr2T=jnp.asarray(Wr2.T), br2=br2.reshape(1, out_dim),
    )


def pack_params(layer_params, WfT, bf, batch, seq):
    """Pre-fuse / pre-layout weights for the fused kernel (layers stacked).

    Folds the (frozen) softmax(alpha) mixture weights into the op weights and
    builds the block-diagonal batched conv weights and the pooling matrix.
    Must be re-run whenever alphas change during NAS training.
    """
    eye_b = jnp.eye(batch, dtype=jnp.float32)
    Wlr, blr, Wc, bc, Wr2p, br2 = [], [], [], [], [], []
    for p in layer_params:
        in_dim, out_dim = p["WlinT"].shape
        w0, w1, w2, w3 = (p["mixw"][0], p["mixw"][1], p["mixw"][2], p["mixw"][3])
        # 'linear' (scaled by w0) + 'moe' identity branch (w2 * I) fold into
        # one matmul weight; the first 'residual' matmul rides along as extra
        # output lanes.
        lin_id = w0 * p["WlinT"] + w2 * jnp.eye(in_dim, out_dim, dtype=jnp.float32)
        Wlr.append(jnp.concatenate([lin_id, p["Wr1T"]], axis=1))            # (D, 2*Dout)
        blr.append(jnp.concatenate([w0 * p["blin"], p["br1"]], axis=1))     # (1, 2*Dout)
        # conv: per-tap block-diagonal (B*Dout, B*S) weights (kron with I_B),
        # stacked over the 3 taps, pre-scaled by w1.  Block-diag grows O(B^2);
        # fine at B=2.
        taps = [jnp.kron(eye_b, w1 * p[n]) for n in ("Wc0", "Wc1", "Wc2")]
        Wc.append(jnp.concatenate(taps, axis=0))                            # (3*B*Dout, B*S)
        bc.append(jnp.tile(jnp.broadcast_to(w1 * p["bc"], (out_dim, in_dim)),
                           (batch, 1)))                                     # (B*Dout, D)
        # second residual matmul, zero top half (kills the lin/identity lanes),
        # pre-scaled by w3.
        Wr2p.append(jnp.concatenate([jnp.zeros_like(p["Wr2T"]),
                                     w3 * p["Wr2T"]], axis=0))              # (2*Dout, Dout)
        br2.append(w3 * p["br2"])
    # Pooling matrix: row b holds 1/S over sample b's row block of (B*S, D) x.
    pool = jnp.kron(eye_b, jnp.full((1, seq), 1.0 / seq, jnp.float32))      # (B, B*S)
    return dict(
        Wlr=jnp.stack(Wlr), blr=jnp.stack(blr),
        Wc=jnp.stack(Wc), bc=jnp.stack(bc),
        Wr2p=jnp.stack(Wr2p), br2=jnp.stack(br2),
        pool=pool, WfT=WfT, bf=bf,
    )


# ----------------------------------------------------------------------------
# Pure-JAX reference (mirrors the PyTorch forward semantics exactly)
# ----------------------------------------------------------------------------
def _layer_ref(x, p):
    prec = jax.lax.Precision.HIGHEST
    w = p["mixw"]
    lin = jnp.einsum("bsd,do->bso", x, p["WlinT"], precision=prec) + p["blin"]
    xpad = jnp.pad(x, ((0, 0), (0, 0), (1, 1)))
    conv = (jnp.einsum("os,bsd->bod", p["Wc0"], xpad[:, :, :-2], precision=prec)
            + jnp.einsum("os,bsd->bod", p["Wc1"], xpad[:, :, 1:-1], precision=prec)
            + jnp.einsum("os,bsd->bod", p["Wc2"], xpad[:, :, 2:], precision=prec)
            + p["bc"][None, :, :])
    ident = x
    h = jax.nn.relu(jnp.einsum("bsd,do->bso", x, p["Wr1T"], precision=prec) + p["br1"])
    res = jnp.einsum("bso,op->bsp", h, p["Wr2T"], precision=prec) + p["br2"]
    return w[0] * lin + w[1] * conv + w[2] * ident + w[3] * res


def _supernet_ref(x, layer_params, WfT, bf):
    for p in layer_params:
        x = _layer_ref(x, p)
    pooled = jnp.mean(x, axis=1)                    # transpose + avgpool + squeeze
    return jnp.dot(pooled, WfT, precision=jax.lax.Precision.HIGHEST) + bf


# ----------------------------------------------------------------------------
if __name__ == "__main__":
    B, S, D = 2, 32, 32        # batch, seq (= conv channels), feature dim
    num_layers = 2             # input_dim = hidden_dim = output_dim = 32

    root = jax.random.PRNGKey(0)
    k_x, k_l0, k_l1, k_fw, k_fb = jax.random.split(root, 5)

    x = jax.random.normal(k_x, (B, S, D), jnp.float32)

    layer_params = [
        init_layer_params(k_l0, D, D),      # layer 0: in 32 -> hidden 32
        init_layer_params(k_l1, D, D),      # layer 1 (last): hidden 32 -> output 32
    ]
    # final_proj: nn.Linear(current_dim=32, output_dim=32)
    Wf, bfv = _linear_init(k_fw, k_fb, D, D)
    WfT = jnp.asarray(Wf.T)
    bf2 = bfv.reshape(1, D)

    packed = pack_params(layer_params, WfT, bf2, batch=B, seq=S)

    out = supernet_forward(x, packed)
    out = jax.block_until_ready(out)

    ref = _supernet_ref(x, layer_params, WfT, bf2)
    np.testing.assert_allclose(np.asarray(out), np.asarray(ref), rtol=2e-3, atol=2e-3)

    print("KERNEL_OK")
</pallas_src>

<mosaic_0001>
module attributes {stable_mosaic.version = 11 : i64} {
  func.func @_supernet_kernel(%arg0: memref<64x32xf32, #tpu.memory_space<vmem>>, %arg1: memref<2x32x64xf32, #tpu.memory_space<vmem>>, %arg2: memref<2x1x64xf32, #tpu.memory_space<vmem>>, %arg3: memref<2x192x64xf32, #tpu.memory_space<vmem>>, %arg4: memref<2x64x32xf32, #tpu.memory_space<vmem>>, %arg5: memref<2x64x32xf32, #tpu.memory_space<vmem>>, %arg6: memref<2x1x32xf32, #tpu.memory_space<vmem>>, %arg7: memref<2x64xf32, #tpu.memory_space<vmem>>, %arg8: memref<32x32xf32, #tpu.memory_space<vmem>>, %arg9: memref<1x32xf32, #tpu.memory_space<vmem>>, %arg10: memref<2x32xf32, #tpu.memory_space<vmem>>) attributes {dimension_semantics = [], scalar_prefetch = 0 : i64, scratch_operands = 0 : i64, tpu.core_type = #tpu.core_type<tc>} {
    %c0 = arith.constant 0 : index
    %c0_0 = arith.constant 0 : index
    %0 = vector.load %arg0[%c0, %c0_0] : memref<64x32xf32, #tpu.memory_space<vmem>>, vector<64x32xf32>
    %1 = tpu.iota {dimensions = array<i32: 1>} : vector<64x32xi32>
    %c1_i32 = arith.constant 1 : i32
    %2 = vector.broadcast %c1_i32 : i32 to vector<64x32xi32>
    %3 = arith.cmpi sge, %1, %2 : vector<64x32xi32>
    %c30_i32 = arith.constant 30 : i32
    %4 = vector.broadcast %c30_i32 : i32 to vector<64x32xi32>
    %5 = arith.cmpi sle, %1, %4 : vector<64x32xi32>
    %c0_1 = arith.constant 0 : index
    %c0_2 = arith.constant 0 : index
    %c0_3 = arith.constant 0 : index
    %6 = vector.load %arg1[%c0_1, %c0_2, %c0_3] : memref<2x32x64xf32, #tpu.memory_space<vmem>>, vector<1x32x64xf32>
    %7 = vector.shape_cast %6 : vector<1x32x64xf32> to vector<32x64xf32>
    %cst = arith.constant dense<0.000000e+00> : vector<64x64xf32>
    %8 = tpu.matmul %0, %7, %cst {dimension_numbers = #tpu.dot_dimension_numbers<[1], [0], [0], [1], [0, 0, 1, 1], [], []>} : vector<64x32xf32>, vector<32x64xf32>, vector<64x64xf32> -> vector<64x64xf32>
    %c0_4 = arith.constant 0 : index
    %c0_5 = arith.constant 0 : index
    %c0_6 = arith.constant 0 : index
    %9 = vector.load %arg2[%c0_4, %c0_5, %c0_6] : memref<2x1x64xf32, #tpu.memory_space<vmem>>, vector<1x1x64xf32>
    %10 = vector.shape_cast %9 : vector<1x1x64xf32> to vector<1x64xf32>
    %11 = vector.broadcast %10 : vector<1x64xf32> to vector<64x64xf32>
    %12 = arith.addf %8, %11 : vector<64x64xf32>
    %13 = vector.extract_strided_slice %12 {offsets = [0, 0], sizes = [64, 32], strides = [1, 1]} : vector<64x64xf32> to vector<64x32xf32>
    %cst_7 = arith.constant 0.000000e+00 : f32
    %14 = vector.broadcast %cst_7 : f32 to vector<64x64xf32>
    %15 = arith.maximumf %12, %14 : vector<64x64xf32>
    %c0_8 = arith.constant 0 : index
    %c0_9 = arith.constant 0 : index
    %c0_10 = arith.constant 0 : index
    %16 = vector.load %arg5[%c0_8, %c0_9, %c0_10] : memref<2x64x32xf32, #tpu.memory_space<vmem>>, vector<1x64x32xf32>
    %17 = vector.shape_cast %16 : vector<1x64x32xf32> to vector<64x32xf32>
    %cst_11 = arith.constant dense<0.000000e+00> : vector<64x32xf32>
    %18 = tpu.matmul %15, %17, %cst_11 {dimension_numbers = #tpu.dot_dimension_numbers<[1], [0], [0], [1], [0, 0, 1, 1], [], []>} : vector<64x64xf32>, vector<64x32xf32>, vector<64x32xf32> -> vector<64x32xf32>
    %c0_12 = arith.constant 0 : index
    %c0_13 = arith.constant 0 : index
    %c0_14 = arith.constant 0 : index
    %19 = vector.load %arg6[%c0_12, %c0_13, %c0_14] : memref<2x1x32xf32, #tpu.memory_space<vmem>>, vector<1x1x32xf32>
    %20 = vector.shape_cast %19 : vector<1x1x32xf32> to vector<1x32xf32>
    %21 = vector.broadcast %20 : vector<1x32xf32> to vector<64x32xf32>
    %22 = arith.addf %18, %21 : vector<64x32xf32>
    %c0_15 = arith.constant 0 : index
    %c0_16 = arith.constant 0 : index
    %c0_17 = arith.constant 0 : index
    %23 = vector.load %arg3[%c0_15, %c0_16, %c0_17] : memref<2x192x64xf32, #tpu.memory_space<vmem>>, vector<1x192x64xf32>
    %24 = vector.shape_cast %23 : vector<1x192x64xf32> to vector<192x64xf32>
    %cst_18 = arith.constant dense<0.000000e+00> : vector<192x32xf32>
    %25 = tpu.matmul %24, %0, %cst_18 {dimension_numbers = #tpu.dot_dimension_numbers<[1], [0], [0], [1], [0, 0, 1, 1], [], []>} : vector<192x64xf32>, vector<64x32xf32>, vector<192x32xf32> -> vector<192x32xf32>
    %26 = vector.extract_strided_slice %25 {offsets = [0, 0], sizes = [64, 32], strides = [1, 1]} : vector<192x32xf32> to vector<64x32xf32>
    %27 = vector.extract_strided_slice %25 {offsets = [64, 0], sizes = [64, 32], strides = [1, 1]} : vector<192x32xf32> to vector<64x32xf32>
    %28 = vector.extract_strided_slice %25 {offsets = [128, 0], sizes = [64, 32], strides = [1, 1]} : vector<192x32xf32> to vector<64x32xf32>
    %c1_i32_19 = arith.constant 1 : i32
    %29 = tpu.dynamic_rotate %26 by %c1_i32_19 dim 1 : vector<64x32xf32>, i32 -> vector<64x32xf32>
    %cst_20 = arith.constant 0.000000e+00 : f32
    %30 = vector.broadcast %cst_20 : f32 to vector<64x32xf32>
    %31 = arith.select %3, %29, %30 : vector<64x32xi1>, vector<64x32xf32>
    %32 = arith.addf %31, %27 : vector<64x32xf32>
    %c31_i32 = arith.constant 31 : i32
    %33 = tpu.dynamic_rotate %28 by %c31_i32 dim 1 : vector<64x32xf32>, i32 -> vector<64x32xf32>
    %cst_21 = arith.constant 0.000000e+00 : f32
    %34 = vector.broadcast %cst_21 : f32 to vector<64x32xf32>
    %35 = arith.select %5, %33, %34 : vector<64x32xi1>, vector<64x32xf32>
    %36 = arith.addf %32, %35 : vector<64x32xf32>
    %c0_22 = arith.constant 0 : index
    %c0_23 = arith.constant 0 : index
    %c0_24 = arith.constant 0 : index
    %37 = vector.load %arg4[%c0_22, %c0_23, %c0_24] : memref<2x64x32xf32, #tpu.memory_space<vmem>>, vector<1x64x32xf32>
    %38 = vector.shape_cast %37 : vector<1x64x32xf32> to vector<64x32xf32>
    %39 = arith.addf %36, %38 : vector<64x32xf32>
    %40 = arith.addf %13, %39 : vector<64x32xf32>
    %41 = arith.addf %40, %22 : vector<64x32xf32>
    %c1 = arith.constant 1 : index
    %c0_25 = arith.constant 0 : index
    %c0_26 = arith.constant 0 : index
    %42 = vector.load %arg1[%c1, %c0_25, %c0_26] : memref<2x32x64xf32, #tpu.memory_space<vmem>>, vector<1x32x64xf32>
    %43 = vector.shape_cast %42 : vector<1x32x64xf32> to vector<32x64xf32>
    %cst_27 = arith.constant dense<0.000000e+00> : vector<64x64xf32>
    %44 = tpu.matmul %41, %43, %cst_27 {dimension_numbers = #tpu.dot_dimension_numbers<[1], [0], [0], [1], [0, 0, 1, 1], [], []>} : vector<64x32xf32>, vector<32x64xf32>, vector<64x64xf32> -> vector<64x64xf32>
    %c1_28 = arith.constant 1 : index
    %c0_29 = arith.constant 0 : index
    %c0_30 = arith.constant 0 : index
    %45 = vector.load %arg2[%c1_28, %c0_29, %c0_30] : memref<2x1x64xf32, #tpu.memory_space<vmem>>, vector<1x1x64xf32>
    %46 = vector.shape_cast %45 : vector<1x1x64xf32> to vector<1x64xf32>
    %47 = vector.broadcast %46 : vector<1x64xf32> to vector<64x64xf32>
    %48 = arith.addf %44, %47 : vector<64x64xf32>
    %49 = vector.extract_strided_slice %48 {offsets = [0, 0], sizes = [64, 32], strides = [1, 1]} : vector<64x64xf32> to vector<64x32xf32>
    %cst_31 = arith.constant 0.000000e+00 : f32
    %50 = vector.broadcast %cst_31 : f32 to vector<64x64xf32>
    %51 = arith.maximumf %48, %50 : vector<64x64xf32>
    %c1_32 = arith.constant 1 : index
    %c0_33 = arith.constant 0 : index
    %c0_34 = arith.constant 0 : index
    %52 = vector.load %arg5[%c1_32, %c0_33, %c0_34] : memref<2x64x32xf32, #tpu.memory_space<vmem>>, vector<1x64x32xf32>
    %53 = vector.shape_cast %52 : vector<1x64x32xf32> to vector<64x32xf32>
    %cst_35 = arith.constant dense<0.000000e+00> : vector<64x32xf32>
    %54 = tpu.matmul %51, %53, %cst_35 {dimension_numbers = #tpu.dot_dimension_numbers<[1], [0], [0], [1], [0, 0, 1, 1], [], []>} : vector<64x64xf32>, vector<64x32xf32>, vector<64x32xf32> -> vector<64x32xf32>
    %c1_36 = arith.constant 1 : index
    %c0_37 = arith.constant 0 : index
    %c0_38 = arith.constant 0 : index
    %55 = vector.load %arg6[%c1_36, %c0_37, %c0_38] : memref<2x1x32xf32, #tpu.memory_space<vmem>>, vector<1x1x32xf32>
    %56 = vector.shape_cast %55 : vector<1x1x32xf32> to vector<1x32xf32>
    %57 = vector.broadcast %56 : vector<1x32xf32> to vector<64x32xf32>
    %58 = arith.addf %54, %57 : vector<64x32xf32>
    %c1_39 = arith.constant 1 : index
    %c0_40 = arith.constant 0 : index
    %c0_41 = arith.constant 0 : index
    %59 = vector.load %arg3[%c1_39, %c0_40, %c0_41] : memref<2x192x64xf32, #tpu.memory_space<vmem>>, vector<1x192x64xf32>
    %60 = vector.shape_cast %59 : vector<1x192x64xf32> to vector<192x64xf32>
    %cst_42 = arith.constant dense<0.000000e+00> : vector<192x32xf32>
    %61 = tpu.matmul %60, %41, %cst_42 {dimension_numbers = #tpu.dot_dimension_numbers<[1], [0], [0], [1], [0, 0, 1, 1], [], []>} : vector<192x64xf32>, vector<64x32xf32>, vector<192x32xf32> -> vector<192x32xf32>
    %62 = vector.extract_strided_slice %61 {offsets = [0, 0], sizes = [64, 32], strides = [1, 1]} : vector<192x32xf32> to vector<64x32xf32>
    %63 = vector.extract_strided_slice %61 {offsets = [64, 0], sizes = [64, 32], strides = [1, 1]} : vector<192x32xf32> to vector<64x32xf32>
    %64 = vector.extract_strided_slice %61 {offsets = [128, 0], sizes = [64, 32], strides = [1, 1]} : vector<192x32xf32> to vector<64x32xf32>
    %c1_i32_43 = arith.constant 1 : i32
    %65 = tpu.dynamic_rotate %62 by %c1_i32_43 dim 1 : vector<64x32xf32>, i32 -> vector<64x32xf32>
    %cst_44 = arith.constant 0.000000e+00 : f32
    %66 = vector.broadcast %cst_44 : f32 to vector<64x32xf32>
    %67 = arith.select %3, %65, %66 : vector<64x32xi1>, vector<64x32xf32>
    %68 = arith.addf %67, %63 : vector<64x32xf32>
    %c31_i32_45 = arith.constant 31 : i32
    %69 = tpu.dynamic_rotate %64 by %c31_i32_45 dim 1 : vector<64x32xf32>, i32 -> vector<64x32xf32>
    %cst_46 = arith.constant 0.000000e+00 : f32
    %70 = vector.broadcast %cst_46 : f32 to vector<64x32xf32>
    %71 = arith.select %5, %69, %70 : vector<64x32xi1>, vector<64x32xf32>
    %72 = arith.addf %68, %71 : vector<64x32xf32>
    %c1_47 = arith.constant 1 : index
    %c0_48 = arith.constant 0 : index
    %c0_49 = arith.constant 0 : index
    %73 = vector.load %arg4[%c1_47, %c0_48, %c0_49] : memref<2x64x32xf32, #tpu.memory_space<vmem>>, vector<1x64x32xf32>
    %74 = vector.shape_cast %73 : vector<1x64x32xf32> to vector<64x32xf32>
    %75 = arith.addf %72, %74 : vector<64x32xf32>
    %76 = arith.addf %49, %75 : vector<64x32xf32>
    %77 = arith.addf %76, %58 : vector<64x32xf32>
    %c0_50 = arith.constant 0 : index
    %c0_51 = arith.constant 0 : index
    %78 = vector.load %arg7[%c0_50, %c0_51] : memref<2x64xf32, #tpu.memory_space<vmem>>, vector<2x64xf32>
    %cst_52 = arith.constant dense<0.000000e+00> : vector<2x32xf32>
    %79 = tpu.matmul %78, %77, %cst_52 {dimension_numbers = #tpu.dot_dimension_numbers<[1], [0], [0], [1], [0, 0, 1, 1], [], []>} : vector<2x64xf32>, vector<64x32xf32>, vector<2x32xf32> -> vector<2x32xf32>
    %c0_53 = arith.constant 0 : index
    %c0_54 = arith.constant 0 : index
    %80 = vector.load %arg8[%c0_53, %c0_54] : memref<32x32xf32, #tpu.memory_space<vmem>>, vector<32x32xf32>
    %cst_55 = arith.constant dense<0.000000e+00> : vector<2x32xf32>
    %81 = tpu.matmul %79, %80, %cst_55 {dimension_numbers = #tpu.dot_dimension_numbers<[1], [0], [0], [1], [0, 0, 1, 1], [], []>} : vector<2x32xf32>, vector<32x32xf32>, vector<2x32xf32> -> vector<2x32xf32>
    %c0_56 = arith.constant 0 : index
    %c0_57 = arith.constant 0 : index
    %82 = vector.load %arg9[%c0_56, %c0_57] : memref<1x32xf32, #tpu.memory_space<vmem>>, vector<1x32xf32>
    %83 = vector.broadcast %82 : vector<1x32xf32> to vector<2x32xf32>
    %84 = arith.addf %81, %83 : vector<2x32xf32>
    %c0_58 = arith.constant 0 : index
    %c0_59 = arith.constant 0 : index
    %85 = vector.load %arg10[%c0_58, %c0_59] : memref<2x32xf32, #tpu.memory_space<vmem>>, vector<2x32xf32>
    tpu.vector_store %arg10[%c0_58, %c0_59], %84 {strides = array<i32>} : memref<2x32xf32, #tpu.memory_space<vmem>>, vector<2x32xf32>,
    return
  }
}

</mosaic_0001>

<bundles_post_ra>
// kernel: supernet_forward.1
= control target key start
LH: loop header
LB: loop body
LE: loop exit
PB: predicated region body
PF: predicated region fallthrough
CT: control target
= control target key end

     0   :  { %vm59_vm0 = vcmask 261120   ;;  %s3531_s0 = inlined_call_operand.vmem [shape: f32[64,32], index: 0, kind: input, shape index: {}]   ;;  %s3532_s1 = inlined_call_operand.vmem [shape: f32[2,32,64], index: 1, kind: input, shape index: {}]   ;;  %s3533_s2 = inlined_call_operand.vmem [shape: f32[2,1,64], index: 2, kind: input, shape index: {}]   ;;  %s3534_s3 = inlined_call_operand.vmem [shape: f32[2,192,64], index: 3, kind: input, shape index: {}]   ;;  %s3535_s4 = inlined_call_operand.vmem [shape: f32[2,64,32], index: 4, kind: input, shape index: {}]   ;;  %s3536_s5 = inlined_call_operand.vmem [shape: f32[2,64,32], index: 5, kind: input, shape index: {}]   ;;  %s3537_s6 = inlined_call_operand.vmem [shape: f32[2,1,32], index: 6, kind: input, shape index: {}]   ;;  %s3538_s7 = inlined_call_operand.vmem [shape: f32[2,64], index: 7, kind: input, shape index: {}]   ;;  %s3539_s8 = inlined_call_operand.vmem [shape: f32[32,32], index: 8, kind: input, shape index: {}]   ;;  %s3540_s9 = inlined_call_operand.vmem [shape: f32[1,32], index: 9, kind: input, shape index: {}]   ;;  %s3541_s10 = inlined_call_operand.hbm [shape: f32[2,32], index: 10, kind: output, shape index: {}]  }
   0x1   :  { %v48_v0 = vld [vmem:[%s3532_s1] sm:$0xff]  ;;  %v49_v1 = vld [vmem:[%s3532_s1 + $0x8] sm:$0xff]  ;;  %v50_v2 = vld [vmem:[%s3532_s1 + $0x10] sm:$0xff] }
   0x2   :  { %v2322_v3 = vpack.c.bf16 %v49_v1, %v48_v0  ;;  %v51_v4 = vld [vmem:[%s3532_s1 + $0x18] sm:$0xff]  ;;  %v36_v5 = vld [vmem:[%s3531_s0] sm:$0xff]  ;;  %v37_v6 = vld [vmem:[%s3531_s0 + $0x8] sm:$0xff] }
   0x3   :  { %v2326_v7 = vpack.c.bf16 %v51_v4, %v50_v2  ;;  %2100 = vmatprep.mubr.msk.f32.mxu1 %vm59_vm0, %v36_v5  ;;  %v2346_v8 = vpack.c.bf16 %v37_v6, %v36_v5  ;;  %v197_v9 = vld [vmem:[%s3536_s5] sm:$0xff]  ;;  %v198_v10 = vld [vmem:[%s3536_s5 + $0x8] sm:$0xff]  ;;  %v199_v12 = vld [vmem:[%s3536_s5 + $0x10] sm:$0xff] }
   0x4   :  { %2323 = vmatprep.subr.bf16.mxu1 %v2322_v3  ;;  %v2330_v11 = vpack.c.bf16 %v198_v10, %v197_v9  ;;  %v200_v13 = vld [vmem:[%s3536_s5 + $0x18] sm:$0xff] }
   0x5   :  { %2325 = vmatpush3.bf16.msra.mxu1 %v2322_v3 }
   0x6   :  { %2327 = vmatprep.subr.bf16.mxu1 %v2326_v7 }
   0x7   :  { %15 = vsyncpa [#allocation3], 0  ;;  %v38_v14 = vld [vmem:[%s3531_s0 + $0x10] sm:$0xff]  ;;  %v2334_v15 = vpack.c.bf16 %v200_v13, %v199_v12  ;;  %v201_v16 = vld [vmem:[%s3536_s5 + $0x20] sm:$0xff]  ;;  %vm212_vm1 = vcmask 523264   ;;  %s2547_s20 = smov 32  }
   0x8   :  { %v202_v17 = vld [vmem:[%s3536_s5 + $0x28] sm:$0xff]  ;;  %v39_v18 = vld [vmem:[%s3531_s0 + $0x18] sm:$0xff]  ;;  %v40_v19 = vld [vmem:[%s3531_s0 + $0x20] sm:$0xff]  ;;  %vm623_vm2 = vcmask 1047808   ;;  %s2548_s23 = smov 97   ;;  %vm2551_vm5 = vmmov 0  }
   0x9   :  { %2329 = vmatpush3.bf16.msra.mxu1 %v2326_v7  ;;  %v2338_v20 = vpack.c.bf16 %v202_v17, %v201_v16  ;;  %v41_v21 = vld [vmem:[%s3531_s0 + $0x28] sm:$0xff]  ;;  %v42_v22 = vld [vmem:[%s3531_s0 + $0x30] sm:$0xff]  ;;  %v43_v23 = vld [vmem:[%s3531_s0 + $0x38] sm:$0xff]  ;;  %v2350_v37 = vpack.c.bf16 %v39_v18, %v38_v14  ;;  %vm1809_vm6 = vcmask 254976  }
   0xa   :  { %2331 = vmatprep.subr.bf16.mxu1 %v2330_v11  ;;  %v203_v24 = vld [vmem:[%s3536_s5 + $0x30] sm:$0xff]  ;;  %v204_v25 = vld [vmem:[%s3536_s5 + $0x38] sm:$0xff]  ;;  %v1825_v27 = vld [vmem:[%s3533_s2] ss:$0 sm:$0xff]  ;;  %v2354_v44 = vpack.c.bf16 %v41_v21, %v40_v19  ;;  %v2358_v51 = vpack.c.bf16 %v43_v23, %v42_v22 }
   0xb   :  { %v2342_v26 = vpack.c.bf16 %v204_v25, %v203_v24  ;;  %v342_v55 = vld [vmem:[%s3534_s3] sm:$0xff]  ;;  %v343_v56 = vld [vmem:[%s3534_s3 + $0x8] sm:$0xff]  ;;  %v344_v57 = vld [vmem:[%s3534_s3 + $0x10] sm:$0xff] }
   0xc   :  { %2101 = vmatmul.mubr.msk.f32.vlgmr.msra.gmra.mrb[0].mxu1 %vm59_vm0, %v37_v6  ;;  %v345_v58 = vld [vmem:[%s3534_s3 + $0x18] sm:$0xff]  ;;  %v346_v59 = vld [vmem:[%s3534_s3 + $0x20] sm:$0xff]  ;;  %v347_v60 = vld [vmem:[%s3534_s3 + $0x28] sm:$0xff] }
   0xd   :  { %2103 = vmatprep.mubr.msk.f32.mxu1 %vm59_vm0, %v38_v14  ;;  %2333 = vmatpush3.bf16.msra.mxu1 %v2330_v11  ;;  %v348_v61 = vld [vmem:[%s3534_s3 + $0x30] sm:$0xff]  ;;  %v349_v62 = vld [vmem:[%s3534_s3 + $0x38] sm:$0xff]  ;;  %v350_v63 = vld [vmem:[%s3534_s3 + $0x40] sm:$0xff] }
   0xe   :  { %2335 = vmatprep.subr.bf16.mxu1 %v2334_v15  ;;  %v351_v0 = vld [vmem:[%s3534_s3 + $0x48] sm:$0xff]  ;;  %v352_v1 = vld [vmem:[%s3534_s3 + $0x50] sm:$0xff]  ;;  %v353_v2 = vld [vmem:[%s3534_s3 + $0x58] sm:$0xff] }
   0xf   :  { %v354_v3 = vld [vmem:[%s3534_s3 + $0x60] sm:$0xff]  ;;  %v355_v4 = vld [vmem:[%s3534_s3 + $0x68] sm:$0xff]  ;;  %v356_v5 = vld [vmem:[%s3534_s3 + $0x70] sm:$0xff] }
  0x10   :  { %2104 = vmatmul.mubr.msk.f32.gmra.mrb[2].mxu1 %vm59_vm0, %v39_v18  ;;  %v357_v6 = vld [vmem:[%s3534_s3 + $0x78] sm:$0xff]  ;;  %v358_v7 = vld [vmem:[%s3534_s3 + $0x80] sm:$0xff]  ;;  %v360_v9 = vld [vmem:[%s3534_s3 + $0x90] sm:$0xff] }
  0x11   :  { %2106 = vmatprep.mubr.msk.f32.mxu1 %vm59_vm0, %v40_v19  ;;  %2337 = vmatpush3.bf16.msra.mxu1 %v2334_v15  ;;  %v361_v10 = vld [vmem:[%s3534_s3 + $0x98] sm:$0xff]  ;;  %v362_v11 = vld [vmem:[%s3534_s3 + $0xa0] sm:$0xff]  ;;  %v363_v12 = vld [vmem:[%s3534_s3 + $0xa8] sm:$0xff] }
  0x12   :  { %2339 = vmatprep.subr.bf16.mxu1 %v2338_v20  ;;  %v364_v13 = vld [vmem:[%s3534_s3 + $0xb0] sm:$0xff]  ;;  %v365_v14 = vld [vmem:[%s3534_s3 + $0xb8] sm:$0xff] }
  0x14   :  { %2107 = vmatmul.mubr.msk.f32.gmra.mrb[4].mxu1 %vm59_vm0, %v41_v21 }
  0x15   :  { %2109 = vmatprep.mubr.msk.f32.mxu1 %vm59_vm0, %v42_v22  ;;  %2341 = vmatpush3.bf16.msra.mxu1 %v2338_v20  ;;  %v1834_v22 = vld [vmem:[%s3537_s6] ss:$0 sm:$0xff] }
  0x16   :  { %2343 = vmatprep.subr.bf16.mxu1 %v2342_v26 }
  0x18   :  { %2110 = vmatmul.mubr.msk.f32.gmra.mrb[6].mxu1 %vm59_vm0, %v43_v23 }
  0x19   :  { %2345 = vmatpush3.bf16.msra.mxu1 %v2342_v26 }
  0x1a   :  { %2347 = vmatprep.subr.bf16.mxu1 %v2346_v8 }
  0xdf   :  { %v2102_v28 = vpop.f32.mrb[0].mxu1 }
  0xe0   :  { %v2680_v29 = vadd.f32 %v2102_v28, %v1825_v27  ;;  %v150_v30 = vpop.f32.mrb[1].mxu1 }
  0xe1   :  { %v2682_v31 = vadd.f32 %v1825_v27, %v150_v30 }
  0xe2   :  { %v190_v34 = vmax.f32 %v2680_v29, 0.0  ;;  %v2420_v24 = vadd.f32 %v1834_v22, %v2680_v29 }
  0xe3   :  { %v189_v32 = vmax.f32 %v2682_v31, 0.0  ;;  %v2105_v33 = vpop.f32.mrb[2].mxu1  ;;  %v2425_v26 = vadd.f32 %v1834_v22, %v2682_v31 }
  0xe4   :  { %v2686_v35 = vadd.f32 %v2105_v33, %v1825_v27  ;;  %v160_v36 = vpop.f32.mrb[3].mxu1 }
  0xe5   :  { %v2688_v38 = vadd.f32 %v1825_v27, %v160_v36  ;;  %2128 = vmatprep.mubr.msk.f32.mxu1 %vm212_vm1, %v189_v32 }
  0xe6   :  { %2129 = vmatmul.mubr.msk.f32.vlgmr.msra.gmra.mrb[8].mxu1 %vm212_vm1, %v190_v34  ;;  %v192_v41 = vmax.f32 %v2686_v35, 0.0  ;;  %v2430_v32 = vadd.f32 %v1834_v22, %v2686_v35 }
  0xe7   :  { %v191_v39 = vmax.f32 %v2688_v38, 0.0  ;;  %v2108_v40 = vpop.f32.mrb[4].mxu1  ;;  %2349 = vmatpush3.bf16.msra.mxu1 %v2346_v8  ;;  %v359_v8 = vld [vmem:[%s3534_s3 + $0x88] sm:$0xff]  ;;  %v2435_v34 = vadd.f32 %v1834_v22, %v2688_v38 }
  0xe8   :  { %v2694_v42 = vadd.f32 %v2108_v40, %v1825_v27  ;;  %v170_v43 = vpop.f32.mrb[5].mxu1  ;;  %2351 = vmatprep.subr.bf16.mxu1 %v2350_v37 }
  0xe9   :  { %v2696_v45 = vadd.f32 %v1825_v27, %v170_v43  ;;  %2131 = vmatprep.mubr.msk.f32.mxu1 %vm212_vm1, %v191_v39 }
  0xea   :  { %2132 = vmatmul.mubr.msk.f32.gmra.mrb[10].mxu1 %vm212_vm1, %v192_v41  ;;  %v194_v48 = vmax.f32 %v2694_v42, 0.0  ;;  %v2440_v31 = vadd.f32 %v1834_v22, %v2694_v42 }
  0xeb   :  { %v193_v46 = vmax.f32 %v2696_v45, 0.0  ;;  %v2111_v47 = vpop.f32.mrb[6].mxu1  ;;  %2353 = vmatpush3.bf16.msra.mxu1 %v2350_v37  ;;  %v2445_v40 = vadd.f32 %v1834_v22, %v2696_v45 }
  0xec   :  { %v2702_v49 = vadd.f32 %v2111_v47, %v1825_v27  ;;  %v180_v50 = vpop.f32.mrb[7].mxu1  ;;  %2355 = vmatprep.subr.bf16.mxu1 %v2354_v44 }
  0xed   :  { %v2704_v52 = vadd.f32 %v1825_v27, %v180_v50  ;;  %2134 = vmatprep.mubr.msk.f32.mxu1 %vm212_vm1, %v193_v46 }
  0xee   :  { %2135 = vmatmul.mubr.msk.f32.gmra.mrb[12].mxu1 %vm212_vm1, %v194_v48  ;;  %v196_v54 = vmax.f32 %v2702_v49, 0.0  ;;  %v2450_v35 = vadd.f32 %v1834_v22, %v2702_v49 }
  0xef   :  { %v195_v53 = vmax.f32 %v2704_v52, 0.0  ;;  %2357 = vmatpush3.bf16.msra.mxu1 %v2354_v44  ;;  %v2455_v38 = vadd.f32 %v1834_v22, %v2704_v52 }
  0xf0   :  { %2359 = vmatprep.subr.bf16.mxu1 %v2358_v51 }
  0xf1   :  { %2137 = vmatprep.mubr.msk.f32.mxu1 %vm212_vm1, %v195_v53 }
  0xf2   :  { %2138 = vmatmul.mubr.msk.f32.gmra.mrb[14].mxu1 %vm212_vm1, %v196_v54 }
  0xf3   :  { %2361 = vmatpush3.bf16.msra.mxu1 %v2358_v51  ;;  %2156 = vmatprep.mubr.msk.f32.mxu1 %vm212_vm1, %v342_v55 }
  0xf6   :  { %2157 = vmatmul.mubr.msk.f32.vlgmr.msra.gmra.mrb[16].mxu1 %vm212_vm1, %v343_v56 }
  0xf7   :  { %2159 = vmatprep.mubr.msk.f32.mxu1 %vm212_vm1, %v344_v57 }
  0xfa   :  { %2160 = vmatmul.mubr.msk.f32.gmra.mrb[18].mxu1 %vm212_vm1, %v345_v58 }
  0xfb   :  { %2162 = vmatprep.mubr.msk.f32.mxu1 %vm212_vm1, %v346_v59 }
  0xfe   :  { %2163 = vmatmul.mubr.msk.f32.gmra.mrb[20].mxu1 %vm212_vm1, %v347_v60 }
  0xff   :  { %2165 = vmatprep.mubr.msk.f32.mxu1 %vm212_vm1, %v348_v61 }
 0x102   :  { %2166 = vmatmul.mubr.msk.f32.gmra.mrb[22].mxu1 %vm212_vm1, %v349_v62 }
 0x103   :  { %2168 = vmatprep.mubr.msk.f32.mxu1 %vm212_vm1, %v350_v63 }
 0x106   :  { %2169 = vmatmul.mubr.msk.f32.gmra.mrb[8].mxu1 %vm212_vm1, %v351_v0 }
 0x107   :  { %2171 = vmatprep.mubr.msk.f32.mxu1 %vm212_vm1, %v352_v1 }
 0x10a   :  { %2172 = vmatmul.mubr.msk.f32.gmra.mrb[10].mxu1 %vm212_vm1, %v353_v2 }
 0x10b   :  { %2174 = vmatprep.mubr.msk.f32.mxu1 %vm212_vm1, %v354_v3 }
 0x10e   :  { %2175 = vmatmul.mubr.msk.f32.gmra.mrb[12].mxu1 %vm212_vm1, %v355_v4 }
 0x10f   :  { %2177 = vmatprep.mubr.msk.f32.mxu1 %vm212_vm1, %v356_v5 }
 0x112   :  { %2178 = vmatmul.mubr.msk.f32.gmra.mrb[14].mxu1 %vm212_vm1, %v357_v6 }
 0x113   :  { %2180 = vmatprep.mubr.msk.f32.mxu1 %vm212_vm1, %v358_v7 }
 0x116   :  { %2181 = vmatmul.mubr.msk.f32.gmra.mrb[24].mxu1 %vm212_vm1, %v359_v8 }
 0x117   :  { %2183 = vmatprep.mubr.msk.f32.mxu1 %vm212_vm1, %v360_v9 }
 0x11a   :  { %2184 = vmatmul.mubr.msk.f32.gmra.mrb[26].mxu1 %vm212_vm1, %v361_v10 }
 0x11b   :  { %2186 = vmatprep.mubr.msk.f32.mxu1 %vm212_vm1, %v362_v11 }
 0x11e   :  { %2187 = vmatmul.mubr.msk.f32.gmra.mrb[28].mxu1 %vm212_vm1, %v363_v12 }
 0x11f   :  { %2189 = vmatprep.mubr.msk.f32.mxu1 %vm212_vm1, %v364_v13 }
 0x122   :  { %2190 = vmatmul.mubr.msk.f32.gmra.mrb[30].mxu1 %vm212_vm1, %v365_v14 }
 0x1c9   :  { %v2808_v15 = vpop.f32.mrb[16].mxu1 }
 0x1ca   :  { %627 = vrot.lane.b32.xlu0 %v2808_v15, %s2547_s20  ;;  %v2812_v16 = vpop.f32.mrb[17].mxu1 }
 0x1cd   :  { %v2814_v17 = vpop.f32.mrb[18].mxu1 }
 0x1ce   :  { %624 = vrot.lane.b32.xlu0 %v2812_v16, %s2547_s20  ;;  %633 = vrot.lane.b32.xlu1 %v2814_v17, %s2547_s20  ;;  %v2820_v18 = vpop.f32.mrb[19].mxu1 }
 0x1d1   :  { %v2822_v19 = vpop.f32.mrb[20].mxu1 }
 0x1d2   :  { %630 = vrot.lane.b32.xlu0 %v2820_v18, %s2547_s20  ;;  %639 = vrot.lane.b32.xlu1 %v2822_v19, %s2547_s20  ;;  %v2828_v20 = vpop.f32.mrb[21].mxu1 }
 0x1d5   :  { %v2830_v21 = vpop.f32.mrb[22].mxu1 }
 0x1d6   :  { %636 = vrot.lane.b32.xlu0 %v2828_v20, %s2547_s20  ;;  %v2837_v23 = vpop.f32.mrb[23].mxu1 }
 0x1d9   :  { %v2170_v25 = vpop.f32.mrb[8].mxu1 }
 0x1da   :  { %v2841_v27 = vadd.f32 %v2420_v24, %v2170_v25  ;;  %642 = vrot.lane.b32.xlu0 %v2837_v23, %s2547_s20  ;;  %v544_v28 = vpop.f32.mrb[9].mxu1 }
 0x1db   :  { %v2845_v30 = vadd.f32 %v2425_v26, %v544_v28 }
 0x1dd   :  { %v2173_v33 = vpop.f32.mrb[10].mxu1 }
 0x1de   :  { %v2849_v36 = vadd.f32 %v2430_v32, %v2173_v33  ;;  %v554_v37 = vpop.f32.mrb[11].mxu1 }
 0x1df   :  { %v2851_v29 = vadd.f32 %v2435_v34, %v554_v37 }
 0x1e1   :  { %v2176_v39 = vpop.f32.mrb[12].mxu1 }
 0x1e2   :  { %v2855_v41 = vadd.f32 %v2440_v31, %v2176_v39  ;;  %v564_v43 = vpop.f32.mrb[13].mxu1 }
 0x1e3   :  { %v2857_v44 = vadd.f32 %v2445_v40, %v564_v43 }
 0x1e5   :  { %v2179_v46 = vpop.f32.mrb[14].mxu1 }
 0x1e6   :  { %v2861_v47 = vadd.f32 %v2450_v35, %v2179_v46  ;;  %v574_v48 = vpop.f32.mrb[15].mxu1 }
 0x1e7   :  { %v2863_v50 = vadd.f32 %v2455_v38, %v574_v48 }
 0x1e9   :  { %v2865_v51 = vpop.f32.mrb[24].mxu1 }
 0x1ea   :  { %723 = vrot.lane.b32.xlu1 %v2865_v51, %s2547_s20  ;;  %v2869_v42 = vpop.f32.mrb[25].mxu1 }
 0x1ed   :  { %v2871_v45 = vpop.f32.mrb[26].mxu1 }
 0x1ee   :  { %720 = vrot.lane.b32.xlu1 %v2869_v42, %s2547_s20  ;;  %v2875_v49 = vpop.f32.mrb[27].mxu1 }
 0x1ef   :  { %726 = vrot.lane.b32.xlu0 %v2875_v49, %s2547_s20 }
 0x1f1   :  { %v2879_v52 = vpop.f32.mrb[28].mxu1 }
 0x1f2   :  { %645 = vrot.lane.b32.xlu1 %v2830_v21, %s2547_s20  ;;  %v2883_v53 = vpop.f32.mrb[29].mxu1 }
 0x1f3   :  { %732 = vrot.lane.b32.xlu0 %v2883_v53, %s2547_s20 }
 0x1f5   :  { %v2887_v54 = vpop.f32.mrb[30].mxu1 }
 0x1f6   :  { %729 = vrot.lane.b32.xlu1 %v2871_v45, %s2547_s20  ;;  %v2891_v55 = vpop.f32.mrb[31].mxu1 }
 0x1f7   :  { %738 = vrot.lane.b32.xlu0 %v2891_v55, %s2547_s20 }
 0x1fa   :  { %735 = vrot.lane.b32.xlu1 %v2879_v52, %s2547_s20 }
 0x1fe   :  { %741 = vrot.lane.b32.xlu1 %v2887_v54, %s2547_s20 }
 0x23c   :  { %v628_v56 = vpop.permute.xlu0 %627 }
 0x23d   :  { %v629_v57 = vsel %vm623_vm2, %v628_v56, %v2808_v15 }
 0x23e   :  { %650 = vrot.lane.b32.xlu1 %v629_v57, %s2547_s20 }
 0x240   :  { %v625_v58 = vpop.permute.xlu0 %624  ;;  %v634_v59 = vpop.permute.xlu1 %633 }
 0x241   :  { %v635_v60 = vsel %vm623_vm2, %v634_v59, %v2814_v17  ;;  %v626_v61 = vsel %vm623_vm2, %v625_v58, %v2812_v16 }
 0x242   :  { %654 = vrot.lane.b32.xlu1 %v635_v60, %s2547_s20  ;;  %648 = vrot.lane.b32.xlu0 %v626_v61, %s2547_s20  ;;  %v1881_v61 = vld [vmem:[%s3536_s5 + $0x40] sm:$0xff] }
 0x244   :  { %v631_v62 = vpop.permute.xlu0 %630  ;;  %v640_v63 = vpop.permute.xlu1 %639 }
 0x245   :  { %v641_v0 = vsel %vm623_vm2, %v640_v63, %v2822_v19  ;;  %v632_v1 = vsel %vm623_vm2, %v631_v62, %v2820_v18  ;;  %v1882_v62 = vld [vmem:[%s3536_s5 + $0x48] sm:$0xff] }
 0x246   :  { %658 = vrot.lane.b32.xlu1 %v641_v0, %s2547_s20  ;;  %652 = vrot.lane.b32.xlu0 %v632_v1, %s2547_s20  ;;  %v2986_v63 = vpack.c.bf16 %v1882_v62, %v1881_v61 }
 0x248   :  { %v637_v2 = vpop.permute.xlu0 %636 }
 0x249   :  { %v638_v3 = vsel %vm623_vm2, %v637_v2, %v2828_v20 }
 0x24a   :  { %656 = vrot.lane.b32.xlu0 %v638_v3, %s2547_s20 }
 0x24c   :  { %v643_v4 = vpop.permute.xlu0 %642 }
 0x24d   :  { %v644_v5 = vsel %vm623_vm2, %v643_v4, %v2837_v23 }
 0x24e   :  { %660 = vrot.lane.b32.xlu0 %v644_v5, %s2547_s20 }
 0x25c   :  { %v724_v6 = vpop.permute.xlu1 %723 }
 0x25d   :  { %v725_v22 = vsel %vm623_vm2, %v724_v6, %v2865_v51 }
 0x260   :  { %v721_v7 = vpop.permute.xlu1 %720 }
 0x261   :  { %v727_v8 = vpop.permute.xlu0 %726  ;;  %v722_v9 = vsel %vm623_vm2, %v721_v7, %v2869_v42 }
 0x262   :  { %744 = vrot.lane.b32.xlu0 %v722_v9, %s2547_s20  ;;  %v728_v13 = vsel %vm623_vm2, %v727_v8, %v2875_v49 }
 0x264   :  { %v646_v10 = vpop.permute.xlu1 %645 }
 0x265   :  { %v733_v11 = vpop.permute.xlu0 %732  ;;  %v647_v12 = vsel %vm623_vm2, %v646_v10, %v2830_v21 }
 0x266   :  { %662 = vrot.lane.b32.xlu1 %v647_v12, %s2547_s20  ;;  %748 = vrot.lane.b32.xlu0 %v728_v13, %s2547_s20  ;;  %v734_v24 = vsel %vm623_vm2, %v733_v11, %v2883_v53 }
 0x268   :  { %v730_v14 = vpop.permute.xlu1 %729 }
 0x269   :  { %v739_v25 = vpop.permute.xlu0 %738  ;;  %v731_v28 = vsel %vm623_vm2, %v730_v14, %v2871_v45  ;;  %v44_v14 = vlaneseq }
 0x26a   :  { %746 = vrot.lane.b32.xlu1 %v725_v22, %s2547_s20  ;;  %752 = vrot.lane.b32.xlu0 %v734_v24, %s2547_s20  ;;  %v740_v32 = vsel %vm623_vm2, %v739_v25, %v2891_v55 }
 0x26b   :  { %v3016_v24 = vand.u32 127, %v44_v14  ;;  %v822_v14 = vld [vmem:[%s3535_s4 + $0x30] sm:$0xff] }
 0x26c   :  { %v736_v26 = vpop.permute.xlu1 %735 }
 0x26d   :  { %v737_v33 = vsel %vm623_vm2, %v736_v26, %v2879_v52  ;;  %vm46_vm3 = vcmp.ge.s32.totalorder %v3016_v24, 1  ;;  %vm47_vm4 = vcmp.le.s32.totalorder %v3016_v24, 30 }
 0x26e   :  { %750 = vrot.lane.b32.xlu1 %v731_v28, %s2547_s20  ;;  %756 = vrot.lane.b32.xlu0 %v740_v32, %s2547_s20 }
 0x270   :  { %v742_v34 = vpop.permute.xlu1 %741 }
 0x271   :  { %v743_v37 = vsel %vm623_vm2, %v742_v34, %v2887_v54  ;;  %v816_v34 = vld [vmem:[%s3535_s4] sm:$0xff] }
 0x272   :  { %754 = vrot.lane.b32.xlu1 %v737_v33, %s2547_s20 }
 0x276   :  { %758 = vrot.lane.b32.xlu1 %v743_v37, %s2547_s20 }
 0x2b0   :  { %v651_v31 = vpop.permute.xlu1 %650 }
 0x2b1   :  { %v665_v39 = vsel %vm623_vm2, %v651_v31, %v2808_v15 }
 0x2b2   :  { %682 = vrot.lane.b32.xlu1 %v665_v39, %s2548_s23 }
 0x2b4   :  { %v655_v40 = vpop.permute.xlu1 %654  ;;  %v649_v43 = vpop.permute.xlu0 %648 }
 0x2b5   :  { %v667_v35 = vsel %vm623_vm2, %v655_v40, %v2814_v17  ;;  %v664_v46 = vsel %vm623_vm2, %v649_v43, %v2812_v16 }
 0x2b6   :  { %686 = vrot.lane.b32.xlu1 %v667_v35, %s2548_s23  ;;  %680 = vrot.lane.b32.xlu0 %v664_v46, %s2548_s23 }
 0x2b8   :  { %v659_v38 = vpop.permute.xlu1 %658  ;;  %v653_v48 = vpop.permute.xlu0 %652 }
 0x2b9   :  { %v669_v15 = vsel %vm623_vm2, %v659_v38, %v2822_v19  ;;  %v666_v56 = vsel %vm623_vm2, %v653_v48, %v2820_v18  ;;  %v1867_v18 = vld [vmem:[%s3532_s1 + $0x20] sm:$0xff]  ;;  %v1868_v19 = vld [vmem:[%s3532_s1 + $0x28] sm:$0xff] }
 0x2ba   :  { %690 = vrot.lane.b32.xlu1 %v669_v15, %s2548_s23  ;;  %684 = vrot.lane.b32.xlu0 %v666_v56, %s2548_s23  ;;  %v2362_v59 = vpack.c.bf16 %v1868_v19, %v1867_v18  ;;  %v818_v18 = vld [vmem:[%s3535_s4 + $0x10] sm:$0xff] }
 0x2bc   :  { %v657_v17 = vpop.permute.xlu0 %656  ;;  %2363 = vmatprep.subr.bf16.mxu0 %v2362_v59 }
 0x2bd   :  { %v668_v16 = vsel %vm623_vm2, %v657_v17, %v2828_v20  ;;  %2365 = vmatpush3.bf16.msra.mxu0 %v2362_v59  ;;  %v1869_v20 = vld [vmem:[%s3532_s1 + $0x30] sm:$0xff] }
 0x2be   :  { %688 = vrot.lane.b32.xlu0 %v668_v16, %s2548_s23 }
 0x2c0   :  { %v661_v57 = vpop.permute.xlu0 %660 }
 0x2c1   :  { %v670_v58 = vsel %vm623_vm2, %v661_v57, %v2837_v23  ;;  %v1870_v23 = vld [vmem:[%s3532_s1 + $0x38] sm:$0xff]  ;;  %s2549_s1 = smov 127   ;;  %v817_v57 = vld [vmem:[%s3535_s4 + $0x8] sm:$0xff] }
 0x2c2   :  { %692 = vrot.lane.b32.xlu0 %v670_v58, %s2548_s23  ;;  %v2366_v60 = vpack.c.bf16 %v1870_v23, %v1869_v20 }
 0x2c4   :  { %2367 = vmatprep.subr.bf16.mxu0 %v2366_v60 }
 0x2c5   :  { %2369 = vmatpush3.bf16.msra.mxu0 %v2366_v60 }
 0x2c6   :  { %2371 = vmatprep.subr.bf16.mxu0 %v2986_v63 }
 0x2d4   :  { %v745_v0 = vpop.permute.xlu0 %744 }
 0x2d5   :  { %v760_v1 = vsel %vm623_vm2, %v745_v0, %v2869_v42 }
 0x2d6   :  { %776 = vrot.lane.b32.xlu0 %v760_v1, %s2549_s1 }
 0x2d8   :  { %v663_v2 = vpop.permute.xlu1 %662  ;;  %v749_v3 = vpop.permute.xlu0 %748 }
 0x2d9   :  { %v671_v4 = vsel %vm623_vm2, %v663_v2, %v2830_v21  ;;  %v762_v5 = vsel %vm623_vm2, %v749_v3, %v2875_v49 }
 0x2da   :  { %694 = vrot.lane.b32.xlu1 %v671_v4, %s2548_s23  ;;  %780 = vrot.lane.b32.xlu0 %v762_v5, %s2549_s1  ;;  %v819_v5 = vld [vmem:[%s3535_s4 + $0x18] sm:$0xff] }
 0x2dc   :  { %v747_v6 = vpop.permute.xlu1 %746  ;;  %v753_v7 = vpop.permute.xlu0 %752 }
 0x2dd   :  { %v761_v42 = vsel %vm623_vm2, %v747_v6, %v2865_v51  ;;  %v764_v8 = vsel %vm623_vm2, %v753_v7, %v2883_v53  ;;  %v1886_v6 = vld [vmem:[%s3536_s5 + $0x68] sm:$0xff]  ;;  %v820_v7 = vld [vmem:[%s3535_s4 + $0x20] sm:$0xff] }
 0x2de   :  { %778 = vrot.lane.b32.xlu1 %v761_v42, %s2549_s1  ;;  %784 = vrot.lane.b32.xlu0 %v764_v8, %s2549_s1 }
 0x2e0   :  { %v751_v21 = vpop.permute.xlu1 %750  ;;  %v757_v9 = vpop.permute.xlu0 %756 }
 0x2e1   :  { %v763_v49 = vsel %vm623_vm2, %v751_v21, %v2871_v45  ;;  %v766_v10 = vsel %vm623_vm2, %v757_v9, %v2891_v55 }
 0x2e2   :  { %782 = vrot.lane.b32.xlu1 %v763_v49, %s2549_s1  ;;  %788 = vrot.lane.b32.xlu0 %v766_v10, %s2549_s1 }
 0x2e4   :  { %v755_v51 = vpop.permute.xlu1 %754 }
 0x2e5   :  { %v765_v53 = vsel %vm623_vm2, %v755_v51, %v2879_v52 }
 0x2e6   :  { %786 = vrot.lane.b32.xlu1 %v765_v53, %s2549_s1 }
 0x2e8   :  { %v759_v11 = vpop.permute.xlu1 %758 }
 0x2e9   :  { %v767_v12 = vsel %vm623_vm2, %v759_v11, %v2887_v54 }
 0x2ea   :  { %790 = vrot.lane.b32.xlu1 %v767_v12, %s2549_s1 }
 0x324   :  { %v683_v55 = vpop.permute.xlu1 %682 }
 0x325   :  { %v705_v35 = vsel %vm46_vm3, %v683_v55, 0.0 }
 0x326   :  { %v2422_v38 = vadd.f32 %v2841_v27, %v705_v35  ;;  %v1883_v27 = vld [vmem:[%s3536_s5 + $0x50] sm:$0xff] }
 0x328   :  { %v681_v45 = vpop.permute.xlu0 %680  ;;  %v687_v25 = vpop.permute.xlu1 %686 }
 0x329   :  { %v704_v52 = vsel %vm46_vm3, %v681_v45, 0.0  ;;  %v707_v17 = vsel %vm46_vm3, %v687_v25, 0.0 }
 0x32a   :  { %v2427_v54 = vadd.f32 %v2845_v30, %v704_v52  ;;  %v2432_v23 = vadd.f32 %v2849_v36, %v707_v17  ;;  %v1885_v36 = vld [vmem:[%s3536_s5 + $0x60] sm:$0xff] }
 0x32b   :  { %v2378_v53 = vpack.c.bf16 %v1886_v6, %v1885_v36  ;;  %v1905_v36 = vld [vmem:[%s3534_s3 + $0xf0] sm:$0xff]  ;;  %v1906_v6 = vld [vmem:[%s3534_s3 + $0xf8] sm:$0xff] }
 0x32c   :  { %v685_v13 = vpop.permute.xlu0 %684  ;;  %v691_v28 = vpop.permute.xlu1 %690 }
 0x32d   :  { %v706_v31 = vsel %vm46_vm3, %v685_v13, 0.0  ;;  %v709_v2 = vsel %vm46_vm3, %v691_v28, 0.0  ;;  %v821_v13 = vld [vmem:[%s3535_s4 + $0x28] sm:$0xff] }
 0x32e   :  { %v2437_v46 = vadd.f32 %v2851_v29, %v706_v31  ;;  %v1884_v29 = vld [vmem:[%s3536_s5 + $0x58] sm:$0xff]  ;;  %v2442_v49 = vadd.f32 %v2855_v41, %v709_v2  ;;  %v1887_v41 = vld [vmem:[%s3536_s5 + $0x70] sm:$0xff]  ;;  %v1900_v2 = vld [vmem:[%s3534_s3 + $0xc8] sm:$0xff] }
 0x32f   :  { %v2374_v1 = vpack.c.bf16 %v1884_v29, %v1883_v27 }
 0x330   :  { %v689_v22 = vpop.permute.xlu0 %688 }
 0x331   :  { %v708_v48 = vsel %vm46_vm3, %v689_v22, 0.0 }
 0x332   :  { %v2447_v20 = vadd.f32 %v2857_v44, %v708_v48 }
 0x334   :  { %v693_v26 = vpop.permute.xlu0 %692 }
 0x335   :  { %v710_v60 = vsel %vm46_vm3, %v693_v26, 0.0 }
 0x336   :  { %v2457_v9 = vadd.f32 %v2863_v50, %v710_v60 }
 0x348   :  { %v777_v32 = vpop.permute.xlu0 %776 }
 0x349   :  { %v800_v33 = vsel %vm47_vm4, %v777_v32, 0.0  ;;  %v823_v32 = vld [vmem:[%s3535_s4 + $0x38] sm:$0xff] }
 0x34a   :  { %v2428_v37 = vadd.f32 %v2427_v54, %v800_v33 }
 0x34c   :  { %v695_v39 = vpop.permute.xlu1 %694  ;;  %v781_v40 = vpop.permute.xlu0 %780  ;;  %v2429_v43 = vadd.f32 %v2428_v37, %v816_v34 }
 0x34d   :  { %v802_v30 = vsel %vm47_vm4, %v781_v40, 0.0  ;;  %v711_v11 = vsel %vm46_vm3, %v695_v39, 0.0  ;;  %v1872_v39 = vld [vmem:[%s3533_s2 + $0x1] ss:$0 sm:$0xff] }
 0x34e   :  { %2200 = vmatprep.mubr.msk.f32.mxu0 %vm59_vm0, %v2429_v43  ;;  %v2438_v16 = vadd.f32 %v2437_v46, %v802_v30  ;;  %v2452_v25 = vadd.f32 %v2861_v47, %v711_v11  ;;  %v1916_v11 = vld [vmem:[%s3534_s3 + $0x148] sm:$0xff] }
 0x350   :  { %v779_v15 = vpop.permute.xlu1 %778  ;;  %v785_v56 = vpop.permute.xlu0 %784  ;;  %v2439_v3 = vadd.f32 %v2438_v16, %v818_v18 }
 0x351   :  { %v801_v58 = vsel %vm47_vm4, %v779_v15, 0.0  ;;  %v804_v59 = vsel %vm47_vm4, %v785_v56, 0.0 }
 0x352   :  { %v2423_v19 = vadd.f32 %v2422_v38, %v801_v58  ;;  %v2448_v4 = vadd.f32 %v2447_v20, %v804_v59 }
 0x354   :  { %v2424_v61 = vadd.f32 %v2423_v19, %v817_v57  ;;  %v783_v62 = vpop.permute.xlu1 %782  ;;  %v789_v0 = vpop.permute.xlu0 %788  ;;  %v2449_v12 = vadd.f32 %v2448_v4, %v820_v7  ;;  %v1902_v4 = vld [vmem:[%s3534_s3 + $0xd8] sm:$0xff]  ;;  %v1907_v7 = vld [vmem:[%s3534_s3 + $0x100] sm:$0xff] }
 0x355   :  { %v803_v44 = vsel %vm47_vm4, %v783_v62, 0.0  ;;  %v806_v8 = vsel %vm47_vm4, %v789_v0, 0.0 }
 0x356   :  { %v2433_v42 = vadd.f32 %v2432_v23, %v803_v44  ;;  %2201 = vmatmul.mubr.msk.f32.vlgmr.msra.gmra.mrb[0].mxu0 %vm59_vm0, %v2424_v61  ;;  %v2386_v21 = vpack.c.bf16 %v2424_v61, %v2429_v43  ;;  %v2458_v45 = vadd.f32 %v2457_v9, %v806_v8  ;;  %v1904_v44 = vld [vmem:[%s3534_s3 + $0xe8] sm:$0xff]  ;;  %v1909_v8 = vld [vmem:[%s3534_s3 + $0x110] sm:$0xff]  ;;  %v1911_v9 = vld [vmem:[%s3534_s3 + $0x120] sm:$0xff] }
 0x357   :  { %2373 = vmatpush3.bf16.msra.mxu0 %v2986_v63  ;;  %2203 = vmatprep.mubr.msk.f32.mxu0 %vm59_vm0, %v2439_v3  ;;  %v1888_v63 = vld [vmem:[%s3536_s5 + $0x78] sm:$0xff] }
 0x358   :  { %v2434_v10 = vadd.f32 %v2433_v42, %v819_v5  ;;  %v787_v51 = vpop.permute.xlu1 %786  ;;  %2375 = vmatprep.subr.bf16.mxu0 %v2374_v1  ;;  %v2382_v54 = vpack.c.bf16 %v1888_v63, %v1887_v41  ;;  %v2459_v28 = vadd.f32 %v2458_v45, %v822_v14  ;;  %v1903_v5 = vld [vmem:[%s3534_s3 + $0xe0] sm:$0xff]  ;;  %v1908_v42 = vld [vmem:[%s3534_s3 + $0x108] sm:$0xff]  ;;  %v1918_v45 = vld [vmem:[%s3534_s3 + $0x158] sm:$0xff] }
 0x359   :  { %v805_v50 = vsel %vm47_vm4, %v787_v51, 0.0  ;;  %v1914_v51 = vld [vmem:[%s3534_s3 + $0x138] sm:$0xff]  ;;  %v1921_v41 = vld [vmem:[%s3534_s3 + $0x170] sm:$0xff] }
 0x35a   :  { %v2443_v55 = vadd.f32 %v2442_v49, %v805_v50  ;;  %2204 = vmatmul.mubr.msk.f32.gmra.mrb[2].mxu0 %vm59_vm0, %v2434_v10  ;;  %v2390_v22 = vpack.c.bf16 %v2434_v10, %v2439_v3  ;;  %v1901_v3 = vld [vmem:[%s3534_s3 + $0xd0] sm:$0xff]  ;;  %v1912_v49 = vld [vmem:[%s3534_s3 + $0x128] sm:$0xff]  ;;  %v1922_v63 = vld [vmem:[%s3534_s3 + $0x178] sm:$0xff] }
 0x35b   :  { %2377 = vmatpush3.bf16.msra.mxu0 %v2374_v1  ;;  %2206 = vmatprep.mubr.msk.f32.mxu0 %vm59_vm0, %v2449_v12  ;;  %v1899_v1 = vld [vmem:[%s3534_s3 + $0xc0] sm:$0xff]  ;;  %v1913_v10 = vld [vmem:[%s3534_s3 + $0x130] sm:$0xff]  ;;  %v1920_v50 = vld [vmem:[%s3534_s3 + $0x168] sm:$0xff] }
 0x35c   :  { %v2444_v26 = vadd.f32 %v2443_v55, %v821_v13  ;;  %v791_v52 = vpop.permute.xlu1 %790  ;;  %2379 = vmatprep.subr.bf16.mxu0 %v2378_v53  ;;  %v1919_v13 = vld [vmem:[%s3534_s3 + $0x160] sm:$0xff] }
 0x35d   :  { %v807_v33 = vsel %vm47_vm4, %v791_v52, 0.0 }
 0x35e   :  { %v2453_v34 = vadd.f32 %v2452_v25, %v807_v33  ;;  %2207 = vmatmul.mubr.msk.f32.gmra.mrb[4].mxu0 %vm59_vm0, %v2444_v26  ;;  %v2394_v37 = vpack.c.bf16 %v2444_v26, %v2449_v12  ;;  %v1917_v12 = vld [vmem:[%s3534_s3 + $0x150] sm:$0xff] }
 0x35f   :  { %2381 = vmatpush3.bf16.msra.mxu0 %v2378_v53  ;;  %2209 = vmatprep.mubr.msk.f32.mxu0 %vm59_vm0, %v2459_v28  ;;  %v1915_v53 = vld [vmem:[%s3534_s3 + $0x140] sm:$0xff] }
 0x360   :  { %v2454_v47 = vadd.f32 %v2453_v34, %v823_v32  ;;  %2383 = vmatprep.subr.bf16.mxu0 %v2382_v54 }
 0x362   :  { %2210 = vmatmul.mubr.msk.f32.gmra.mrb[6].mxu0 %vm59_vm0, %v2454_v47  ;;  %v2398_v31 = vpack.c.bf16 %v2454_v47, %v2459_v28  ;;  %v1890_v28 = vld [vmem:[%s3537_s6 + $0x1] ss:$0 sm:$0xff]  ;;  %s2553_s6 = smov [#allocation2]  }
 0x363   :  { %2385 = vmatpush3.bf16.msra.mxu0 %v2382_v54 }
 0x364   :  { %2387 = vmatprep.subr.bf16.mxu0 %v2386_v21 }
 0x429   :  { %v2202_v40 = vpop.f32.mrb[0].mxu0 }
 0x42a   :  { %v3114_v43 = vadd.f32 %v2202_v40, %v1872_v39  ;;  %v951_v35 = vpop.f32.mrb[1].mxu0 }
 0x42b   :  { %v3116_v30 = vadd.f32 %v1872_v39, %v951_v35 }
 0x42c   :  { %v991_v48 = vmax.f32 %v3114_v43, 0.0  ;;  %v2460_v33 = vadd.f32 %v1890_v28, %v3114_v43 }
 0x42d   :  { %v990_v46 = vmax.f32 %v3116_v30, 0.0  ;;  %v2205_v38 = vpop.f32.mrb[2].mxu0 }
 0x42e   :  { %v3120_v15 = vadd.f32 %v2205_v38, %v1872_v39  ;;  %v961_v56 = vpop.f32.mrb[3].mxu0 }
 0x42f   :  { %v3122_v17 = vadd.f32 %v1872_v39, %v961_v56  ;;  %2228 = vmatprep.mubr.msk.f32.mxu0 %vm212_vm1, %v990_v46 }
 0x430   :  { %2229 = vmatmul.mubr.msk.f32.vlgmr.msra.gmra.mrb[8].mxu0 %vm212_vm1, %v991_v48  ;;  %v993_v58 = vmax.f32 %v3120_v15, 0.0  ;;  %v2470_v40 = vadd.f32 %v1890_v28, %v3120_v15 }
 0x431   :  { %v992_v16 = vmax.f32 %v3122_v17, 0.0  ;;  %2389 = vmatpush3.bf16.msra.mxu0 %v2386_v21  ;;  %v2208_v57 = vpop.f32.mrb[4].mxu0  ;;  %v1910_v21 = vld [vmem:[%s3534_s3 + $0x118] sm:$0xff]  ;;  %v2475_v46 = vadd.f32 %v1890_v28, %v3122_v17 }
 0x432   :  { %v3128_v27 = vadd.f32 %v2208_v57, %v1872_v39  ;;  %2391 = vmatprep.subr.bf16.mxu0 %v2390_v22  ;;  %v971_v29 = vpop.f32.mrb[5].mxu0 }
 0x433   :  { %v3130_v18 = vadd.f32 %v1872_v39, %v971_v29  ;;  %2231 = vmatprep.mubr.msk.f32.mxu0 %vm212_vm1, %v992_v16 }
 0x434   :  { %2232 = vmatmul.mubr.msk.f32.gmra.mrb[10].mxu0 %vm212_vm1, %v993_v58  ;;  %v995_v20 = vmax.f32 %v3128_v27, 0.0  ;;  %v2480_v43 = vadd.f32 %v1890_v28, %v3128_v27 }
 0x435   :  { %v994_v19 = vmax.f32 %v3130_v18, 0.0  ;;  %2393 = vmatpush3.bf16.msra.mxu0 %v2390_v22  ;;  %v2211_v59 = vpop.f32.mrb[6].mxu0 }
 0x436   :  { %v3136_v23 = vadd.f32 %v2211_v59, %v1872_v39  ;;  %2395 = vmatprep.subr.bf16.mxu0 %v2394_v37  ;;  %v981_v60 = vpop.f32.mrb[7].mxu0 }
 0x437   :  { %v3138_v61 = vadd.f32 %v1872_v39, %v981_v60  ;;  %2234 = vmatprep.mubr.msk.f32.mxu0 %vm212_vm1, %v994_v19 }
 0x438   :  { %2235 = vmatmul.mubr.msk.f32.gmra.mrb[12].mxu0 %vm212_vm1, %v995_v20  ;;  %v997_v0 = vmax.f32 %v3136_v23, 0.0  ;;  %v2490_v15 = vadd.f32 %v1890_v28, %v3136_v23 }
 0x439   :  { %v996_v62 = vmax.f32 %v3138_v61, 0.0  ;;  %2397 = vmatpush3.bf16.msra.mxu0 %v2394_v37  ;;  %v2465_v37 = vadd.f32 %v1890_v28, %v3116_v30  ;;  %v2485_v30 = vadd.f32 %v1890_v28, %v3130_v18  ;;  %v2495_v17 = vadd.f32 %v1890_v28, %v3138_v61 }
 0x43a   :  { %2399 = vmatprep.subr.bf16.mxu0 %v2398_v31 }
 0x43b   :  { %2237 = vmatprep.mubr.msk.f32.mxu0 %vm212_vm1, %v996_v62 }
 0x43c   :  { %2238 = vmatmul.mubr.msk.f32.gmra.mrb[14].mxu0 %vm212_vm1, %v997_v0 }
 0x43d   :  { %2401 = vmatpush3.bf16.msra.mxu0 %v2398_v31  ;;  %2256 = vmatprep.mubr.msk.f32.mxu0 %vm212_vm1, %v1899_v1 }
 0x440   :  { %2257 = vmatmul.mubr.msk.f32.vlgmr.msra.gmra.mrb[16].mxu0 %vm212_vm1, %v1900_v2 }
 0x441   :  { %2259 = vmatprep.mubr.msk.f32.mxu0 %vm212_vm1, %v1901_v3 }
 0x444   :  { %2260 = vmatmul.mubr.msk.f32.gmra.mrb[18].mxu0 %vm212_vm1, %v1902_v4 }
 0x445   :  { %2262 = vmatprep.mubr.msk.f32.mxu0 %vm212_vm1, %v1903_v5 }
 0x448   :  { %2263 = vmatmul.mubr.msk.f32.gmra.mrb[20].mxu0 %vm212_vm1, %v1904_v44 }
 0x449   :  { %2265 = vmatprep.mubr.msk.f32.mxu0 %vm212_vm1, %v1905_v36 }
 0x44c   :  { %2266 = vmatmul.mubr.msk.f32.gmra.mrb[22].mxu0 %vm212_vm1, %v1906_v6 }
 0x44d   :  { %2268 = vmatprep.mubr.msk.f32.mxu0 %vm212_vm1, %v1907_v7 }
 0x450   :  { %2269 = vmatmul.mubr.msk.f32.gmra.mrb[8].mxu0 %vm212_vm1, %v1908_v42 }
 0x451   :  { %2271 = vmatprep.mubr.msk.f32.mxu0 %vm212_vm1, %v1909_v8 }
 0x454   :  { %2272 = vmatmul.mubr.msk.f32.gmra.mrb[10].mxu0 %vm212_vm1, %v1910_v21 }
 0x455   :  { %2274 = vmatprep.mubr.msk.f32.mxu0 %vm212_vm1, %v1911_v9 }
 0x458   :  { %2275 = vmatmul.mubr.msk.f32.gmra.mrb[12].mxu0 %vm212_vm1, %v1912_v49 }
 0x459   :  { %2277 = vmatprep.mubr.msk.f32.mxu0 %vm212_vm1, %v1913_v10 }
 0x45c   :  { %2278 = vmatmul.mubr.msk.f32.gmra.mrb[14].mxu0 %vm212_vm1, %v1914_v51 }
 0x45d   :  { %2280 = vmatprep.mubr.msk.f32.mxu0 %vm212_vm1, %v1915_v53 }
 0x460   :  { %2281 = vmatmul.mubr.msk.f32.gmra.mrb[24].mxu0 %vm212_vm1, %v1916_v11 }
 0x461   :  { %2283 = vmatprep.mubr.msk.f32.mxu0 %vm212_vm1, %v1917_v12 }
 0x464   :  { %2284 = vmatmul.mubr.msk.f32.gmra.mrb[26].mxu0 %vm212_vm1, %v1918_v45 }
 0x465   :  { %2286 = vmatprep.mubr.msk.f32.mxu0 %vm212_vm1, %v1919_v13 }
 0x468   :  { %2287 = vmatmul.mubr.msk.f32.gmra.mrb[28].mxu0 %vm212_vm1, %v1920_v50 }
 0x469   :  { %2289 = vmatprep.mubr.msk.f32.mxu0 %vm212_vm1, %v1921_v41 }
 0x46c   :  { %2290 = vmatmul.mubr.msk.f32.gmra.mrb[30].mxu0 %vm212_vm1, %v1922_v63 }
 0x513   :  { %v3242_v14 = vpop.f32.mrb[16].mxu0 }
 0x514   :  { %1429 = vrot.lane.b32.xlu1 %v3242_v14, %s2547_s20  ;;  %v3246_v55 = vpop.f32.mrb[17].mxu0 }
 0x515   :  { %1426 = vrot.lane.b32.xlu0 %v3246_v55, %s2547_s20 }
 0x517   :  { %v3250_v22 = vpop.f32.mrb[18].mxu0 }
 0x518   :  { %1435 = vrot.lane.b32.xlu1 %v3250_v22, %s2547_s20  ;;  %v3254_v25 = vpop.f32.mrb[19].mxu0 }
 0x519   :  { %1432 = vrot.lane.b32.xlu0 %v3254_v25, %s2547_s20 }
 0x51b   :  { %v3258_v26 = vpop.f32.mrb[20].mxu0 }
 0x51c   :  { %1441 = vrot.lane.b32.xlu1 %v3258_v26, %s2547_s20  ;;  %v3262_v52 = vpop.f32.mrb[21].mxu0 }
 0x51d   :  { %1438 = vrot.lane.b32.xlu0 %v3262_v52, %s2547_s20 }
 0x51f   :  { %v3266_v54 = vpop.f32.mrb[22].mxu0 }
 0x520   :  { %1447 = vrot.lane.b32.xlu1 %v3266_v54, %s2547_s20  ;;  %v3273_v32 = vpop.f32.mrb[23].mxu0 }
 0x521   :  { %1444 = vrot.lane.b32.xlu0 %v3273_v32, %s2547_s20 }
 0x523   :  { %v2270_v34 = vpop.f32.mrb[8].mxu0 }
 0x524   :  { %v3279_v47 = vadd.f32 %v2460_v33, %v2270_v34  ;;  %v1347_v31 = vpop.f32.mrb[9].mxu0 }
 0x525   :  { %v3281_v39 = vadd.f32 %v2465_v37, %v1347_v31 }
 0x527   :  { %v2273_v35 = vpop.f32.mrb[10].mxu0 }
 0x528   :  { %v3285_v38 = vadd.f32 %v2470_v40, %v2273_v35  ;;  %v1357_v48 = vpop.f32.mrb[11].mxu0 }
 0x529   :  { %v3287_v56 = vadd.f32 %v2475_v46, %v1357_v48 }
 0x52b   :  { %v2276_v16 = vpop.f32.mrb[12].mxu0 }
 0x52c   :  { %v3291_v57 = vadd.f32 %v2480_v43, %v2276_v16  ;;  %v1367_v58 = vpop.f32.mrb[13].mxu0 }
 0x52d   :  { %v3293_v29 = vadd.f32 %v2485_v30, %v1367_v58 }
 0x52f   :  { %v2279_v19 = vpop.f32.mrb[14].mxu0 }
 0x530   :  { %v3297_v59 = vadd.f32 %v2490_v15, %v2279_v19  ;;  %v1377_v20 = vpop.f32.mrb[15].mxu0 }
 0x531   :  { %v3299_v60 = vadd.f32 %v2495_v17, %v1377_v20 }
 0x533   :  { %v3301_v62 = vpop.f32.mrb[24].mxu0 }
 0x534   :  { %1525 = vrot.lane.b32.xlu1 %v3301_v62, %s2547_s20  ;;  %v3305_v27 = vpop.f32.mrb[25].mxu0 }
 0x535   :  { %1522 = vrot.lane.b32.xlu0 %v3305_v27, %s2547_s20 }
 0x537   :  { %v3309_v18 = vpop.f32.mrb[26].mxu0 }
 0x538   :  { %1531 = vrot.lane.b32.xlu1 %v3309_v18, %s2547_s20  ;;  %v3313_v23 = vpop.f32.mrb[27].mxu0 }
 0x539   :  { %1528 = vrot.lane.b32.xlu0 %v3313_v23, %s2547_s20 }
 0x53b   :  { %v3317_v61 = vpop.f32.mrb[28].mxu0 }
 0x53c   :  { %1537 = vrot.lane.b32.xlu1 %v3317_v61, %s2547_s20  ;;  %v3321_v0 = vpop.f32.mrb[29].mxu0 }
 0x53d   :  { %1534 = vrot.lane.b32.xlu0 %v3321_v0, %s2547_s20 }
 0x53f   :  { %v3325_v1 = vpop.f32.mrb[30].mxu0 }
 0x540   :  { %1543 = vrot.lane.b32.xlu1 %v3325_v1, %s2547_s20  ;;  %v3329_v2 = vpop.f32.mrb[31].mxu0 }
 0x541   :  { %1540 = vrot.lane.b32.xlu0 %v3329_v2, %s2547_s20 }
 0x586   :  { %v1430_v3 = vpop.permute.xlu1 %1429 }
 0x587   :  { %v1427_v4 = vpop.permute.xlu0 %1426  ;;  %v1431_v5 = vsel %vm623_vm2, %v1430_v3, %v3242_v14 }
 0x588   :  { %1452 = vrot.lane.b32.xlu1 %v1431_v5, %s2547_s20  ;;  %v1428_v44 = vsel %vm623_vm2, %v1427_v4, %v3246_v55 }
 0x589   :  { %1450 = vrot.lane.b32.xlu0 %v1428_v44, %s2547_s20 }
 0x58a   :  { %v1436_v36 = vpop.permute.xlu1 %1435 }
 0x58b   :  { %v1433_v6 = vpop.permute.xlu0 %1432  ;;  %v1437_v7 = vsel %vm623_vm2, %v1436_v36, %v3250_v22 }
 0x58c   :  { %1456 = vrot.lane.b32.xlu1 %v1437_v7, %s2547_s20  ;;  %v1434_v42 = vsel %vm623_vm2, %v1433_v6, %v3254_v25 }
 0x58d   :  { %1454 = vrot.lane.b32.xlu0 %v1434_v42, %s2547_s20 }
 0x58e   :  { %v1442_v8 = vpop.permute.xlu1 %1441 }
 0x58f   :  { %v1439_v21 = vpop.permute.xlu0 %1438  ;;  %v1443_v9 = vsel %vm623_vm2, %v1442_v8, %v3258_v26 }
 0x590   :  { %1460 = vrot.lane.b32.xlu1 %v1443_v9, %s2547_s20  ;;  %v1440_v49 = vsel %vm623_vm2, %v1439_v21, %v3262_v52 }
 0x591   :  { %1458 = vrot.lane.b32.xlu0 %v1440_v49, %s2547_s20 }
 0x592   :  { %v1448_v10 = vpop.permute.xlu1 %1447 }
 0x593   :  { %v1445_v51 = vpop.permute.xlu0 %1444  ;;  %v1449_v53 = vsel %vm623_vm2, %v1448_v10, %v3266_v54  ;;  %v2552_v10 = vmov 0.0  }
 0x594   :  { %1464 = vrot.lane.b32.xlu1 %v1449_v53, %s2547_s20  ;;  %v1446_v11 = vsel %vm623_vm2, %v1445_v51, %v3273_v32  ;;  %2308 = vmatprep.mubr.msk.f32.mxu0 %vm2551_vm5, %v2552_v10  ;;  %v1727_v51 = vld [vmem:[%s3539_s8 + $0x10] sm:$0xff] }
 0x595   :  { %1462 = vrot.lane.b32.xlu0 %v1446_v11, %s2547_s20  ;;  %2319 = vmatprep.mubr.msk.f32.mxu1 %vm2551_vm5, %v2552_v10 }
 0x5a6   :  { %v1526_v12 = vpop.permute.xlu1 %1525 }
 0x5a7   :  { %v1523_v45 = vpop.permute.xlu0 %1522  ;;  %v1527_v13 = vsel %vm623_vm2, %v1526_v12, %v3301_v62  ;;  %v1728_v12 = vld [vmem:[%s3539_s8 + $0x18] sm:$0xff] }
 0x5a8   :  { %1548 = vrot.lane.b32.xlu1 %v1527_v13, %s2547_s20  ;;  %v1524_v50 = vsel %vm623_vm2, %v1523_v45, %v3305_v27  ;;  %v2418_v13 = vpack.c.bf16 %v1728_v12, %v1727_v51  ;;  %v1954_v12 = vld [vmem:[%s3535_s4 + $0x78] sm:$0xff] }
 0x5a9   :  { %1546 = vrot.lane.b32.xlu0 %v1524_v50, %s2547_s20 }
 0x5aa   :  { %v1532_v41 = vpop.permute.xlu1 %1531 }
 0x5ab   :  { %v1529_v63 = vpop.permute.xlu0 %1528  ;;  %v1533_v28 = vsel %vm623_vm2, %v1532_v41, %v3309_v18 }
 0x5ac   :  { %1552 = vrot.lane.b32.xlu1 %v1533_v28, %s2547_s20  ;;  %v1530_v33 = vsel %vm623_vm2, %v1529_v63, %v3313_v23 }
 0x5ad   :  { %1550 = vrot.lane.b32.xlu0 %v1530_v33, %s2547_s20 }
 0x5ae   :  { %v1538_v34 = vpop.permute.xlu1 %1537 }
 0x5af   :  { %v1535_v37 = vpop.permute.xlu0 %1534  ;;  %v1539_v31 = vsel %vm623_vm2, %v1538_v34, %v3317_v61 }
 0x5b0   :  { %1556 = vrot.lane.b32.xlu1 %v1539_v31, %s2547_s20  ;;  %v1536_v40 = vsel %vm623_vm2, %v1535_v37, %v3321_v0 }
 0x5b1   :  { %1554 = vrot.lane.b32.xlu0 %v1536_v40, %s2547_s20 }
 0x5b2   :  { %v1544_v35 = vpop.permute.xlu1 %1543 }
 0x5b3   :  { %v1541_v46 = vpop.permute.xlu0 %1540  ;;  %v1545_v48 = vsel %vm623_vm2, %v1544_v35, %v3325_v1 }
 0x5b4   :  { %1560 = vrot.lane.b32.xlu1 %v1545_v48, %s2547_s20  ;;  %v1542_v43 = vsel %vm623_vm2, %v1541_v46, %v3329_v2 }
 0x5b5   :  { %1558 = vrot.lane.b32.xlu0 %v1542_v43, %s2547_s20  ;;  %v1948_v43 = vld [vmem:[%s3535_s4 + $0x48] sm:$0xff]  ;;  %s1817_s20 = sshll.u32 %s2553_s6, 4  ;;  %s1818_s20 = int_to_ptr.vmem [resolvable:$true] %s1817_s20 }
 0x5b6   :  { %p2528_p1 = scmp.lt.s32.totalorder %s1818_s20, %s1818_s20 }
 0x5fa   :  { %v1453_v16 = vpop.permute.xlu1 %1452 }
 0x5fb   :  { %v1451_v30 = vpop.permute.xlu0 %1450  ;;  %v1467_v58 = vsel %vm623_vm2, %v1453_v16, %v3242_v14 }
 0x5fc   :  { %1484 = vrot.lane.b32.xlu1 %v1467_v58, %s2548_s23  ;;  %v1466_v15 = vsel %vm623_vm2, %v1451_v30, %v3246_v55 }
 0x5fd   :  { %1482 = vrot.lane.b32.xlu0 %v1466_v15, %s2548_s23 }
 0x5fe   :  { %v1457_v19 = vpop.permute.xlu1 %1456 }
 0x5ff   :  { %v1455_v17 = vpop.permute.xlu0 %1454  ;;  %v1469_v20 = vsel %vm623_vm2, %v1457_v19, %v3250_v22 }
 0x600   :  { %1488 = vrot.lane.b32.xlu1 %v1469_v20, %s2548_s23  ;;  %v1468_v3 = vsel %vm623_vm2, %v1455_v17, %v3254_v25 }
 0x601   :  { %1486 = vrot.lane.b32.xlu0 %v1468_v3, %s2548_s23 }
 0x602   :  { %v1461_v14 = vpop.permute.xlu1 %1460 }
 0x603   :  { %v1459_v4 = vpop.permute.xlu0 %1458  ;;  %v1471_v5 = vsel %vm623_vm2, %v1461_v14, %v3258_v26  ;;  %v2550_v26 = vmov 0.0|0.0  }
 0x604   :  { %1492 = vrot.lane.b32.xlu1 %v1471_v5, %s2548_s23  ;;  %v1470_v55 = vsel %vm623_vm2, %v1459_v4, %v3262_v52  ;;  %2402 = vmatprep.subr.bf16.mxu0 %v2550_v26 }
 0x605   :  { %1490 = vrot.lane.b32.xlu0 %v1470_v55, %s2548_s23  ;;  %2414 = vmatprep.subr.bf16.mxu1 %v2550_v26  ;;  %v1950_v55 = vld [vmem:[%s3535_s4 + $0x58] sm:$0xff] }
 0x606   :  { %v1465_v22 = vpop.permute.xlu1 %1464 }
 0x607   :  { %v1463_v44 = vpop.permute.xlu0 %1462  ;;  %v1473_v36 = vsel %vm623_vm2, %v1465_v22, %v3266_v54 }
 0x608   :  { %1496 = vrot.lane.b32.xlu1 %v1473_v36, %s2548_s23  ;;  %v1472_v25 = vsel %vm623_vm2, %v1463_v44, %v3273_v32 }
 0x609   :  { %1494 = vrot.lane.b32.xlu0 %v1472_v25, %s2548_s23  ;;  %s2523_s23 = scalar_lea.vmem %s1818_s20, 32 }
 0x60a   :  { %p2524_p0 = scmp.ne.s32.totalorder %s1818_s20, %s2523_s23  ;;  %p2529_p2 = scmp.lt.s32.totalorder %s2523_s23, %s2523_s23 }
 0x60c   :  { %p2530_p3 = por %p2529_p2, %p2528_p1 }
 0x60e   :  { %p2531_p4 = pnand %p2530_p3, %p2524_p0 }
 0x61a   :  { %v1549_v52 = vpop.permute.xlu1 %1548 }
 0x61b   :  { %v1547_v6 = vpop.permute.xlu0 %1546  ;;  %v1563_v7 = vsel %vm623_vm2, %v1549_v52, %v3301_v62 }
 0x61c   :  { %1580 = vrot.lane.b32.xlu1 %v1563_v7, %s2549_s1  ;;  %v1562_v54 = vsel %vm623_vm2, %v1547_v6, %v3305_v27 }
 0x61d   :  { %1578 = vrot.lane.b32.xlu0 %v1562_v54, %s2549_s1 }
 0x61e   :  { %v1553_v32 = vpop.permute.xlu1 %1552 }
 0x61f   :  { %v1551_v42 = vpop.permute.xlu0 %1550  ;;  %v1565_v8 = vsel %vm623_vm2, %v1553_v32, %v3309_v18 }
 0x620   :  { %1584 = vrot.lane.b32.xlu1 %v1565_v8, %s2549_s1  ;;  %v1564_v21 = vsel %vm623_vm2, %v1551_v42, %v3313_v23  ;;  %v1725_v23 = vld [vmem:[%s3539_s8] sm:$0xff] }
 0x621   :  { %1582 = vrot.lane.b32.xlu0 %v1564_v21, %s2549_s1 }
 0x622   :  { %v1557_v62 = vpop.permute.xlu1 %1556 }
 0x623   :  { %v1555_v9 = vpop.permute.xlu0 %1554  ;;  %v1567_v49 = vsel %vm623_vm2, %v1557_v62, %v3317_v61  ;;  %v1726_v61 = vld [vmem:[%s3539_s8 + $0x8] sm:$0xff] }
 0x624   :  { %1588 = vrot.lane.b32.xlu1 %v1567_v49, %s2549_s1  ;;  %v1566_v27 = vsel %vm623_vm2, %v1555_v9, %v3321_v0  ;;  %v2415_v11 = vpack.c.bf16 %v1726_v61, %v1725_v23  ;;  %v1952_v62 = vld [vmem:[%s3535_s4 + $0x68] sm:$0xff] }
 0x625   :  { %1586 = vrot.lane.b32.xlu0 %v1566_v27, %s2549_s1 }
 0x626   :  { %v1561_v18 = vpop.permute.xlu1 %1560  ;;  %2416 = vmatpush3.bf16.msra.mxu1 %v2415_v11 }
 0x627   :  { %v1559_v0 = vpop.permute.xlu0 %1558  ;;  %v1569_v53 = vsel %vm623_vm2, %v1561_v18, %v3325_v1  ;;  %2417 = vmatprep.subr.bf16.mxu1 %v2550_v26 }
 0x628   :  { %1592 = vrot.lane.b32.xlu1 %v1569_v53, %s2549_s1  ;;  %v1568_v45 = vsel %vm623_vm2, %v1559_v0, %v3329_v2 }
 0x629   :  { %1590 = vrot.lane.b32.xlu0 %v1568_v45, %s2549_s1 }
 0x62a   :  { %2419 = vmatpush3.bf16.msra.mxu1 %v2418_v13 }
 0x66e   :  { %v1485_v50 = vpop.permute.xlu1 %1484 }
 0x66f   :  { %v1483_v41 = vpop.permute.xlu0 %1482  ;;  %v1507_v37 = vsel %vm46_vm3, %v1485_v50, 0.0 }
 0x670   :  { %v1506_v2 = vsel %vm46_vm3, %v1483_v41, 0.0  ;;  %v2462_v40 = vadd.f32 %v3279_v47, %v1507_v37  ;;  %v1947_v47 = vld [vmem:[%s3535_s4 + $0x40] sm:$0xff]  ;;  %v1953_v41 = vld [vmem:[%s3535_s4 + $0x70] sm:$0xff] }
 0x671   :  { %v2467_v46 = vadd.f32 %v3281_v39, %v1506_v2 }
 0x672   :  { %v1489_v1 = vpop.permute.xlu1 %1488 }
 0x673   :  { %v1487_v63 = vpop.permute.xlu0 %1486  ;;  %v1509_v48 = vsel %vm46_vm3, %v1489_v1, 0.0 }
 0x674   :  { %v1508_v58 = vsel %vm46_vm3, %v1487_v63, 0.0  ;;  %v2472_v17 = vadd.f32 %v3285_v38, %v1509_v48 }
 0x675   :  { %v2477_v14 = vadd.f32 %v3287_v56, %v1508_v58  ;;  %v1949_v56 = vld [vmem:[%s3535_s4 + $0x50] sm:$0xff] }
 0x676   :  { %v1493_v28 = vpop.permute.xlu1 %1492 }
 0x677   :  { %v1491_v33 = vpop.permute.xlu0 %1490  ;;  %v1511_v4 = vsel %vm46_vm3, %v1493_v28, 0.0 }
 0x678   :  { %v1510_v36 = vsel %vm46_vm3, %v1491_v33, 0.0  ;;  %v2482_v7 = vadd.f32 %v3291_v57, %v1511_v4 }
 0x679   :  { %v2487_v42 = vadd.f32 %v3293_v29, %v1510_v36  ;;  %v1951_v29 = vld [vmem:[%s3535_s4 + $0x60] sm:$0xff] }
 0x67a   :  { %v1497_v34 = vpop.permute.xlu1 %1496 }
 0x67b   :  { %v1495_v31 = vpop.permute.xlu0 %1494  ;;  %v1513_v8 = vsel %vm46_vm3, %v1497_v34, 0.0  ;;  %v1651_v34 = vld [vmem:[%s3538_s7] sm:$0x3] }
 0x67c   :  { %v1512_v57 = vsel %vm46_vm3, %v1495_v31, 0.0  ;;  %v2492_v61 = vadd.f32 %v3297_v59, %v1513_v8  ;;  %v1956_v31 = vld [vmem:[%s3540_s9] ss:$0 sm:$0xff] }
 0x67d   :  { %v2497_v53 = vadd.f32 %v3299_v60, %v1512_v57 }
 0x68e   :  { %v1581_v35 = vpop.permute.xlu1 %1580 }
 0x68f   :  { %v1603_v16 = vsel %vm47_vm4, %v1581_v35, 0.0  ;;  %v1579_v30 = vpop.permute.xlu0 %1578 }
 0x690   :  { %v2463_v15 = vadd.f32 %v2462_v40, %v1603_v16  ;;  %v1602_v39 = vsel %vm47_vm4, %v1579_v30, 0.0 }
 0x691   :  { %v2468_v19 = vadd.f32 %v2467_v46, %v1602_v39 }
 0x692   :  { %v2464_v20 = vadd.f32 %v2463_v15, %v1948_v43  ;;  %v1585_v3 = vpop.permute.xlu1 %1584 }
 0x693   :  { %v2469_v5 = vadd.f32 %v2468_v19, %v1947_v47  ;;  %v1605_v22 = vsel %vm47_vm4, %v1585_v3, 0.0  ;;  %v1583_v44 = vpop.permute.xlu0 %1582 }
 0x694   :  { %v2473_v38 = vadd.f32 %v2472_v17, %v1605_v22  ;;  %v1604_v25 = vsel %vm47_vm4, %v1583_v44, 0.0 }
 0x695   :  { %v2403_v52 = vpack.c.bf16 %v2464_v20, %v2469_v5  ;;  %v2478_v6 = vadd.f32 %v2477_v14, %v1604_v25 }
 0x696   :  { %v2474_v54 = vadd.f32 %v2473_v38, %v1950_v55  ;;  %v1589_v32 = vpop.permute.xlu1 %1588 }
 0x697   :  { %v2479_v21 = vadd.f32 %v2478_v6, %v1949_v56  ;;  %v1607_v9 = vsel %vm47_vm4, %v1589_v32, 0.0  ;;  %2404 = vmatpush3.bf16.msra.mxu0 %v2403_v52  ;;  %v1587_v49 = vpop.permute.xlu0 %1586 }
 0x698   :  { %v2483_v27 = vadd.f32 %v2482_v7, %v1607_v9  ;;  %v1606_v10 = vsel %vm47_vm4, %v1587_v49, 0.0  ;;  %2405 = vmatprep.subr.bf16.mxu0 %v2550_v26 }
 0x699   :  { %v2406_v18 = vpack.c.bf16 %v2474_v54, %v2479_v21  ;;  %v2488_v23 = vadd.f32 %v2487_v42, %v1606_v10 }
 0x69a   :  { %v2484_v51 = vadd.f32 %v2483_v27, %v1952_v62  ;;  %v1593_v0 = vpop.permute.xlu1 %1592 }
 0x69b   :  { %v2489_v11 = vadd.f32 %v2488_v23, %v1951_v29  ;;  %v1609_v45 = vsel %vm47_vm4, %v1593_v0, 0.0  ;;  %2407 = vmatpush3.bf16.msra.mxu0 %v2406_v18  ;;  %v1591_v13 = vpop.permute.xlu0 %1590 }
 0x69c   :  { %v2493_v50 = vadd.f32 %v2492_v61, %v1609_v45  ;;  %v1608_v59 = vsel %vm47_vm4, %v1591_v13, 0.0  ;;  %2408 = vmatprep.subr.bf16.mxu0 %v2550_v26 }
 0x69d   :  { %v2409_v60 = vpack.c.bf16 %v2484_v51, %v2489_v11  ;;  %v2498_v1 = vadd.f32 %v2497_v53, %v1608_v59 }
 0x69e   :  { %v2494_v63 = vadd.f32 %v2493_v50, %v1954_v12 }
 0x69f   :  { %v2499_v28 = vadd.f32 %v2498_v1, %v1953_v41  ;;  %2410 = vmatpush3.bf16.msra.mxu0 %v2409_v60 }
 0x6a0   :  { %2411 = vmatprep.subr.bf16.mxu0 %v2550_v26 }
 0x6a1   :  { %v2412_v33 = vpack.c.bf16 %v2494_v63, %v2499_v28 }
 0x6a3   :  { %2413 = vmatpush3.bf16.msra.mxu0 %v2412_v33 }
 0x6a6   :  { %2309 = vmatmul.mubr.msk.f32.vlgmr.msra.gmra.mrb[32].mxu0 %vm212_vm1, %v1651_v34 }
 0x779   :  { %v1721_v37 = vpop.f32.mrb[32].mxu0 }
 0x77a   :  { %v2310_v24 = vpop.f32.mrb[33].mxu0  ;;  %2320 = vmatmul.mubr.msk.f32.vlgmr.msra.gmra.mrb[32].mxu1 %vm59_vm0, %v1721_v37 }
 0x84d   :  { %v1805_v2 = vpop.f32.mrb[32].mxu1 }
 0x84e   :  { %v1806_v26 = vadd.f32 %v1956_v31, %v1805_v2  ;;  %v2321_v40 = vpop.f32.mrb[33].mxu1 }
 0x850   :  { %1810 = vst.msk [vmem:[#allocation2] sm:$0x3] %vm1809_vm6, %v1806_v26 }
 0x851   :  { %2534 = shalt.err (!%p2531_p4)
}
 0x852   :  { %s2535_s14 = scalar_lea.hbm %s3541_s10, 32 }
 0x853   :  { %p2536_p5 = scmp.ne.s32.totalorder %s3541_s10, %s2535_s14  ;;  %p2539_p6 = scmp.lt.u32.totalorder %s2535_s14, %s3541_s10 }
 0x855   :  { %p2541_p7 = pnand %p2539_p6, %p2536_p5 }
 0x857   :  { %2544 = shalt.err (!%p2541_p7)
}
 0x858   :  { %1820 = dma.vmem_to_hbm [thread:$0]  %s1818_s20, 32, %s3541_s10, [#allocation3]  }
 0x859   :  { %2545 = dma.done.wait [#allocation3], 32  }
 0x85a   :  { %2546 = vsyncadd [#allocation3], 4294967264 }
 0x85b   :  { %1824 = vsyncpa [#allocation3], 1 }

</bundles_post_ra>
